<compile_context>
chip_gen: v5e
topology: v5e:2x2
jax: 0.10.0
libtpu: 0.0.40
codegen_flags: <defaults>
</compile_context>

<pallas_src>
import jax
import jax.numpy as jnp
from jax import lax
from jax.experimental import pallas as pl
from jax.experimental.pallas import tpu as pltpu

_LANE = 128
_OUT_PAD = 128      # fc_out padded to 128 output lanes -> unmasked lane-dense stores


def _round_up(x, m):
    return (x + m - 1) // m * m


# --------------------------------------------------------------------------- #
# Kernels
# --------------------------------------------------------------------------- #
def _resident_kernel(x_ref, w_in_ref, b_in_ref, w1_ref, b1_ref,
                     w2_ref, b2_ref, w_out_ref, b_out_ref, o_ref):
    """All weights resident in VMEM; whole network for one batch tile per step."""
    # fc_in + ReLU
    h = jnp.dot(x_ref[...], w_in_ref[...], preferred_element_type=jnp.float32)
    h = jnp.maximum(h + b_in_ref[...], 0.0)

    nb = w1_ref.shape[0]        # static

    def block(k, h):
        t = jnp.dot(h.astype(jnp.bfloat16), w1_ref[k],
                    preferred_element_type=jnp.float32)
        t = jnp.maximum(t + b1_ref[k], 0.0)
        t = jnp.dot(t.astype(jnp.bfloat16), w2_ref[k],
                    preferred_element_type=jnp.float32)
        return jnp.maximum(t + b2_ref[k] + h, 0.0)

    h = lax.fori_loop(0, nb, block, h, unroll=(nb <= 8))

    # fc_out, lane-dense: (tile_b, H_pad) x (H_pad, 128) -> (tile_b, 128); only
    # column 0 is real (the rest are zero-padded weight columns).
    out = jnp.dot(h.astype(jnp.bfloat16), w_out_ref[...],
                  preferred_element_type=jnp.float32)
    o_ref[...] = (out + b_out_ref[...]).astype(o_ref.dtype)


def _streamed_kernel(x_ref, w_in_ref, b_in_ref, w1_ref, b1_ref,
                     w2_ref, b2_ref, w_out_ref, b_out_ref, o_ref, h_ref):
    """Per-block weights streamed on grid axis 1; activation carried in VMEM scratch."""
    j = pl.program_id(1)
    nb = pl.num_programs(1)

    # fc_in + ReLU only on the first block step.
    @pl.when(j == 0)
    def _():
        h0 = jnp.dot(x_ref[...], w_in_ref[...], preferred_element_type=jnp.float32)
        h_ref[...] = jnp.maximum(h0 + b_in_ref[...], 0.0)

    # Residual block j (its weights were streamed in for this grid step).
    h = h_ref[...]                                    # (tile_b, H_pad) f32 carry
    t = jnp.dot(h.astype(jnp.bfloat16), w1_ref[...],
                preferred_element_type=jnp.float32)
    t = jnp.maximum(t + b1_ref[...], 0.0)
    t = jnp.dot(t.astype(jnp.bfloat16), w2_ref[...],
                preferred_element_type=jnp.float32)
    h_new = jnp.maximum(t + b2_ref[...] + h, 0.0)
    h_ref[...] = h_new

    # fc_out only on the last block step; lane-dense (tile_b, 128) store, no
    # transposed-RHS contraction (w_out is pre-padded to (H_pad, 128) columns).
    @pl.when(j == nb - 1)
    def _():
        out = jnp.dot(h_new.astype(jnp.bfloat16), w_out_ref[...],
                      preferred_element_type=jnp.float32)
        o_ref[...] = (out + b_out_ref[...]).astype(o_ref.dtype)


# --------------------------------------------------------------------------- #
# Parameter packing / planning
# --------------------------------------------------------------------------- #
def pack_params(params, f_pad, h_pad):
    """Zero-pad feature dims, cast matmul weights to bf16, biases stay f32."""
    def pad2(a, r, c):
        return jnp.pad(a, ((0, r - a.shape[0]), (0, c - a.shape[1])))

    def pad3(a, r, c):
        return jnp.pad(a, ((0, 0), (0, r - a.shape[1]), (0, c - a.shape[2])))

    return {
        "w_in":  pad2(params["w_in"], f_pad, h_pad).astype(jnp.bfloat16),
        "b_in":  pad2(params["b_in"], 1, h_pad).astype(jnp.float32),
        "w1":    pad3(params["w1"], h_pad, h_pad).astype(jnp.bfloat16),
        "b1":    pad3(params["b1"], 1, h_pad).astype(jnp.float32),
        "w2":    pad3(params["w2"], h_pad, h_pad).astype(jnp.bfloat16),
        "b2":    pad3(params["b2"], 1, h_pad).astype(jnp.float32),
        "w_out": pad2(params["w_out"], h_pad, _OUT_PAD).astype(jnp.bfloat16),
        "b_out": pad2(params["b_out"], 1, _OUT_PAD).astype(jnp.float32),
    }


def _vmem_capacity_bytes():
    try:
        return int(pltpu.get_tpu_info().vmem_capacity_bytes)
    except Exception:
        return 64 * 1024 * 1024     # conservative (v7x-sized) default


def _plan(batch, f_pad, h_pad, nb, force_streamed):
    """Pick (tile_b, resident-or-streamed, vmem_limit) from the VMEM budget."""
    cap = _vmem_capacity_bytes()
    budget = min((cap * 3) // 4, 100 * 1024 * 1024)     # ~48 MiB v7x, ~96 MiB v5e/v6e
    # 64 MiB VMEM => v7x => 2 TensorCores/chip: keep >= 2 batch tiles so the
    # "parallel" batch axis can feed both cores.  128 MiB parts are single-TC.
    two_cores = cap <= 64 * 1024 * 1024

    w_res = 2 * (f_pad * h_pad + 2 * nb * h_pad * h_pad + h_pad * _OUT_PAD)  # bf16
    b_res = 4 * ((1 + 2 * nb) * h_pad + _OUT_PAD)                            # f32

    def act_bytes(tb):
        return (2 * tb * f_pad * 2          # x tile, double-buffered bf16
                + 2 * tb * _OUT_PAD * 4     # out tile, double-buffered f32
                + 2 * tb * h_pad * 4)       # activation working set / temps f32

    def resident_need(tb):
        # Weights single-buffered (constant index + pl.Buffered(1)).
        return w_res + b_res + act_bytes(tb)

    def streamed_need(tb):
        per_block = 2 * h_pad * h_pad * 2 + 2 * h_pad * 4      # w1+w2 bf16, b1+b2 f32
        invariant = (f_pad * h_pad * 2 + h_pad * 4
                     + h_pad * _OUT_PAD * 2 + _OUT_PAD * 4)     # w_in/b_in/w_out/b_out
        return (2 * per_block + invariant + act_bytes(tb)
                + tb * h_pad * 4)                               # + h scratch

    # Candidate batch tiles, largest first.  Bigger tiles raise the FLOP/byte of
    # the streamed HxH matmuls (the dominant lever when weights are re-streamed).
    if batch < _LANE:
        cands = [_round_up(max(batch, 8), 8)]
    else:
        b128 = _round_up(batch, _LANE)
        top = b128 // 2 if (two_cores and b128 >= 2 * _LANE) else b128
        cands = [t for t in (1024, 512, 256, 128) if t <= top] or [_LANE]

    resident = (not force_streamed) and resident_need(min(cands)) <= budget
    need_fn = resident_need if resident else streamed_need
    tile_b = next((t for t in cands if need_fn(t) <= budget), min(cands))
    # NOTE: for H_pad beyond ~2048 on 64 MiB parts even one (H_pad, H_pad) block
    # is too large; that regime would need K-sub-tiling of the HxH matmuls
    # (extra grid axis / pltpu.emit_pipeline) — not needed at these sizes.
    need = need_fn(tile_b)
    vmem_limit = int(min(budget, max(2 * need, 32 * 1024 * 1024)))
    return tile_b, resident, vmem_limit


# --------------------------------------------------------------------------- #
# Forward wrapper
# --------------------------------------------------------------------------- #
def resnet_forward(x, params, *, force_streamed=False):
    """x: [B, in_features] float32. params: dict of unpadded f32 weights."""
    B, F = x.shape
    H = params["w_in"].shape[1]
    NB = params["w1"].shape[0]
    assert NB >= 1

    F_pad = _round_up(F, _LANE)
    H_pad = _round_up(H, _LANE)

    tile_b, resident, vmem_limit = _plan(B, F_pad, H_pad, NB, force_streamed)
    B_pad = _round_up(B, tile_b)
    num_tiles = B_pad // tile_b

    xb = jnp.pad(x, ((0, B_pad - B), (0, F_pad - F))).astype(jnp.bfloat16)
    pk = pack_params(params, F_pad, H_pad)
    args = (xb, pk["w_in"], pk["b_in"], pk["w1"], pk["b1"],
            pk["w2"], pk["b2"], pk["w_out"], pk["b_out"])

    weight_bytes = sum(int(v.size) * v.dtype.itemsize for v in pk.values())
    flops = 2 * B_pad * H_pad * (F_pad + 2 * NB * H_pad) + 2 * B_pad * H_pad * _OUT_PAD
    io_bytes = int(xb.size) * 2 + B_pad * _OUT_PAD * 4
    # Resident path fetches the weights once total; streamed re-fetches per tile.
    bytes_accessed = io_bytes + (1 if resident else num_tiles) * weight_bytes

    out_shape = jax.ShapeDtypeStruct((B_pad, _OUT_PAD), jnp.float32)
    cost = pl.CostEstimate(flops=int(flops), transcendentals=0,
                           bytes_accessed=int(bytes_accessed))

    def invariant_spec(shape, single_buffer):
        # Grid-invariant input: constant block index; optionally single-buffered
        # to free VMEM (matters most on 64 MiB v7x parts).
        nd = len(shape)
        kwargs = {"pipeline_mode": pl.Buffered(1)} if single_buffer else {}
        return pl.BlockSpec(shape, lambda *_: (0,) * nd, **kwargs)

    def run_resident(single_buffer):
        grid_spec = pltpu.PrefetchScalarGridSpec(
            num_scalar_prefetch=0,
            grid=(num_tiles,),
            in_specs=[
                pl.BlockSpec((tile_b, F_pad), lambda i: (i, 0)),        # x
                invariant_spec((F_pad, H_pad), single_buffer),          # w_in
                invariant_spec((1, H_pad), single_buffer),              # b_in
                invariant_spec((NB, H_pad, H_pad), single_buffer),      # w1 (all blocks)
                invariant_spec((NB, 1, H_pad), single_buffer),          # b1
                invariant_spec((NB, H_pad, H_pad), single_buffer),      # w2
                invariant_spec((NB, 1, H_pad), single_buffer),          # b2
                invariant_spec((H_pad, _OUT_PAD), single_buffer),       # w_out
                invariant_spec((1, _OUT_PAD), single_buffer),           # b_out
            ],
            out_specs=pl.BlockSpec((tile_b, _OUT_PAD), lambda i: (i, 0)),
        )
        return pl.pallas_call(
            _resident_kernel,
            out_shape=out_shape,
            grid_spec=grid_spec,
            compiler_params=pltpu.CompilerParams(
                dimension_semantics=("parallel",),
                vmem_limit_bytes=vmem_limit),
            cost_estimate=cost,
        )(*args)

    def run_streamed(single_buffer):
        grid_spec = pltpu.PrefetchScalarGridSpec(
            num_scalar_prefetch=0,
            grid=(num_tiles, NB),
            in_specs=[
                pl.BlockSpec((tile_b, F_pad), lambda i, j: (i, 0)),     # x
                invariant_spec((F_pad, H_pad), single_buffer),          # w_in
                invariant_spec((1, H_pad), single_buffer),              # b_in
                # Streamed per-block weights: leading dim squeezed (None) so the
                # kernel gets (H_pad, H_pad)/(1, H_pad) refs.  Default double
                # buffering; bump to pl.Buffered(3) only if profiling shows
                # exposed DMA latency on the block axis.
                pl.BlockSpec((None, H_pad, H_pad), lambda i, j: (j, 0, 0)),  # w1[j]
                pl.BlockSpec((None, 1, H_pad), lambda i, j: (j, 0, 0)),      # b1[j]
                pl.BlockSpec((None, H_pad, H_pad), lambda i, j: (j, 0, 0)),  # w2[j]
                pl.BlockSpec((None, 1, H_pad), lambda i, j: (j, 0, 0)),      # b2[j]
                invariant_spec((H_pad, _OUT_PAD), single_buffer),       # w_out
                invariant_spec((1, _OUT_PAD), single_buffer),           # b_out
            ],
            out_specs=pl.BlockSpec((tile_b, _OUT_PAD), lambda i, j: (i, 0)),
            scratch_shapes=[pltpu.VMEM((tile_b, H_pad), jnp.float32)],
        )
        return pl.pallas_call(
            _streamed_kernel,
            out_shape=out_shape,
            grid_spec=grid_spec,
            compiler_params=pltpu.CompilerParams(
                # Keep the block axis "arbitrary": the output is only written at
                # j == NB-1 and relies on writeback happening when i advances.
                dimension_semantics=("parallel", "arbitrary"),
                vmem_limit_bytes=vmem_limit),
            cost_estimate=cost,
        )(*args)

    run = run_resident if resident else run_streamed
    try:
        out2d = run(True)
    except Exception:
        # pl.Buffered(1) single-buffering of grid-invariant inputs is a pure
        # VMEM optimization; fall back to default double buffering if this
        # jax/libtpu build rejects it.
        out2d = run(False)

    return out2d[:B, 0:1]


# --------------------------------------------------------------------------- #
# Reference + test harness
# --------------------------------------------------------------------------- #
def init_params(key, in_features, num_blocks, hidden_size):
    ks = jax.random.split(key, 8)
    s = 0.1
    return {
        "w_in":  s * jax.random.normal(ks[0], (in_features, hidden_size), jnp.float32),
        "b_in":  s * jax.random.normal(ks[1], (1, hidden_size), jnp.float32),
        "w1":    s * jax.random.normal(ks[2], (num_blocks, hidden_size, hidden_size), jnp.float32),
        "b1":    s * jax.random.normal(ks[3], (num_blocks, 1, hidden_size), jnp.float32),
        "w2":    s * jax.random.normal(ks[4], (num_blocks, hidden_size, hidden_size), jnp.float32),
        "b2":    s * jax.random.normal(ks[5], (num_blocks, 1, hidden_size), jnp.float32),
        "w_out": s * jax.random.normal(ks[6], (hidden_size, 1), jnp.float32),
        "b_out": s * jax.random.normal(ks[7], (1, 1), jnp.float32),
    }


def resnet_reference(x, params):
    """Pure-JAX f32 reference mirroring the PyTorch forward."""
    h = jnp.maximum(x @ params["w_in"] + params["b_in"], 0.0)
    for i in range(params["w1"].shape[0]):
        t = jnp.maximum(h @ params["w1"][i] + params["b1"][i], 0.0)
        t = t @ params["w2"][i] + params["b2"][i] + h
        h = jnp.maximum(t, 0.0)
    return h @ params["w_out"] + params["b_out"]


if __name__ == "__main__":
    key = jax.random.PRNGKey(0)
    k_x, k_p = jax.random.split(key)

    batch, in_features, num_blocks, hidden_size = 256, 16, 2, 32
    x = jax.random.normal(k_x, (batch, in_features), jnp.float32)
    params = init_params(k_p, in_features, num_blocks, hidden_size)

    ref = resnet_reference(x, params)

    # Resident-weights path (auto-selected: this model fits easily in VMEM).
    out = jax.block_until_ready(resnet_forward(x, params))
    assert out.shape == (batch, 1)
    # bf16 matmul inputs => loosened tolerance vs the pure-f32 reference.
    assert jnp.allclose(out, ref, atol=3e-2, rtol=3e-2), (
        "resident path max abs err", float(jnp.max(jnp.abs(out - ref))))

    # Streamed-weights path (used automatically when the stacked block weights
    # exceed the VMEM budget); exercised here explicitly for coverage.
    out_s = jax.block_until_ready(resnet_forward(x, params, force_streamed=True))
    assert out_s.shape == (batch, 1)
    assert jnp.allclose(out_s, ref, atol=3e-2, rtol=3e-2), (
        "streamed path max abs err", float(jnp.max(jnp.abs(out_s - ref))))

    print("KERNEL_OK")
</pallas_src>

<mosaic_0001>
module attributes {stable_mosaic.version = 11 : i64} {
  func.func @_resident_kernel(%arg0: i32, %arg1: memref<128x128xbf16, #tpu.memory_space<vmem>>, %arg2: memref<128x128xbf16, #tpu.memory_space<vmem>>, %arg3: memref<1x128xf32, #tpu.memory_space<vmem>>, %arg4: memref<2x128x128xbf16, #tpu.memory_space<vmem>>, %arg5: memref<2x1x128xf32, #tpu.memory_space<vmem>>, %arg6: memref<2x128x128xbf16, #tpu.memory_space<vmem>>, %arg7: memref<2x1x128xf32, #tpu.memory_space<vmem>>, %arg8: memref<128x128xbf16, #tpu.memory_space<vmem>>, %arg9: memref<1x128xf32, #tpu.memory_space<vmem>>, %arg10: memref<128x128xf32, #tpu.memory_space<vmem>>) attributes {dimension_semantics = [#tpu.dimension_semantics<parallel>], iteration_bounds = array<i64: 2>, scalar_prefetch = 0 : i64, scratch_operands = 0 : i64, tpu.core_type = #tpu.core_type<tc>, window_params = [{transform_indices = @transform_0, window_bounds = array<i64: 128, 128>}, {pipeline_mode = #tpu.pipeline_mode<synchronous>, transform_indices = @transform_1, window_bounds = array<i64: 128, 128>}, {pipeline_mode = #tpu.pipeline_mode<synchronous>, transform_indices = @transform_2, window_bounds = array<i64: 1, 128>}, {pipeline_mode = #tpu.pipeline_mode<synchronous>, transform_indices = @transform_3, window_bounds = array<i64: 2, 128, 128>}, {pipeline_mode = #tpu.pipeline_mode<synchronous>, transform_indices = @transform_4, window_bounds = array<i64: 2, 1, 128>}, {pipeline_mode = #tpu.pipeline_mode<synchronous>, transform_indices = @transform_5, window_bounds = array<i64: 2, 128, 128>}, {pipeline_mode = #tpu.pipeline_mode<synchronous>, transform_indices = @transform_6, window_bounds = array<i64: 2, 1, 128>}, {pipeline_mode = #tpu.pipeline_mode<synchronous>, transform_indices = @transform_7, window_bounds = array<i64: 128, 128>}, {pipeline_mode = #tpu.pipeline_mode<synchronous>, transform_indices = @transform_8, window_bounds = array<i64: 1, 128>}, {transform_indices = @transform_9, window_bounds = array<i64: 128, 128>}]} {
    %c0 = arith.constant 0 : index
    %c0_0 = arith.constant 0 : index
    %0 = vector.load %arg1[%c0, %c0_0] : memref<128x128xbf16, #tpu.memory_space<vmem>>, vector<128x128xbf16>
    %c0_1 = arith.constant 0 : index
    %c0_2 = arith.constant 0 : index
    %1 = vector.load %arg2[%c0_1, %c0_2] : memref<128x128xbf16, #tpu.memory_space<vmem>>, vector<128x128xbf16>
    %cst = arith.constant dense<0.000000e+00> : vector<128x128xf32>
    %2 = tpu.matmul %0, %1, %cst {dimension_numbers = #tpu.dot_dimension_numbers<[1], [0], [0], [1], [0, 0, 1, 1], [], []>} : vector<128x128xbf16>, vector<128x128xbf16>, vector<128x128xf32> -> vector<128x128xf32>
    %c0_3 = arith.constant 0 : index
    %c0_4 = arith.constant 0 : index
    %3 = vector.load %arg3[%c0_3, %c0_4] : memref<1x128xf32, #tpu.memory_space<vmem>>, vector<1x128xf32>
    %4 = vector.broadcast %3 : vector<1x128xf32> to vector<128x128xf32>
    %5 = arith.addf %2, %4 : vector<128x128xf32>
    %cst_5 = arith.constant 0.000000e+00 : f32
    %6 = vector.broadcast %cst_5 : f32 to vector<128x128xf32>
    %7 = arith.maximumf %5, %6 : vector<128x128xf32>
    %c0_i32 = arith.constant 0 : i32
    %8 = arith.truncf %7 : vector<128x128xf32> to vector<128x128xbf16>
    %9 = arith.index_cast %c0_i32 : i32 to index
    %c0_6 = arith.constant 0 : index
    %c0_7 = arith.constant 0 : index
    %10 = vector.load %arg4[%9, %c0_6, %c0_7] : memref<2x128x128xbf16, #tpu.memory_space<vmem>>, vector<1x128x128xbf16>
    %11 = vector.shape_cast %10 : vector<1x128x128xbf16> to vector<128x128xbf16>
    %cst_8 = arith.constant dense<0.000000e+00> : vector<128x128xf32>
    %12 = tpu.matmul %8, %11, %cst_8 {dimension_numbers = #tpu.dot_dimension_numbers<[1], [0], [0], [1], [0, 0, 1, 1], [], []>} : vector<128x128xbf16>, vector<128x128xbf16>, vector<128x128xf32> -> vector<128x128xf32>
    %13 = arith.index_cast %c0_i32 : i32 to index
    %c0_9 = arith.constant 0 : index
    %c0_10 = arith.constant 0 : index
    %14 = vector.load %arg5[%13, %c0_9, %c0_10] : memref<2x1x128xf32, #tpu.memory_space<vmem>>, vector<1x1x128xf32>
    %15 = vector.shape_cast %14 : vector<1x1x128xf32> to vector<1x128xf32>
    %16 = vector.broadcast %15 : vector<1x128xf32> to vector<128x128xf32>
    %17 = arith.addf %12, %16 : vector<128x128xf32>
    %cst_11 = arith.constant 0.000000e+00 : f32
    %18 = vector.broadcast %cst_11 : f32 to vector<128x128xf32>
    %19 = arith.maximumf %17, %18 : vector<128x128xf32>
    %20 = arith.truncf %19 : vector<128x128xf32> to vector<128x128xbf16>
    %21 = arith.index_cast %c0_i32 : i32 to index
    %c0_12 = arith.constant 0 : index
    %c0_13 = arith.constant 0 : index
    %22 = vector.load %arg6[%21, %c0_12, %c0_13] : memref<2x128x128xbf16, #tpu.memory_space<vmem>>, vector<1x128x128xbf16>
    %23 = vector.shape_cast %22 : vector<1x128x128xbf16> to vector<128x128xbf16>
    %cst_14 = arith.constant dense<0.000000e+00> : vector<128x128xf32>
    %24 = tpu.matmul %20, %23, %cst_14 {dimension_numbers = #tpu.dot_dimension_numbers<[1], [0], [0], [1], [0, 0, 1, 1], [], []>} : vector<128x128xbf16>, vector<128x128xbf16>, vector<128x128xf32> -> vector<128x128xf32>
    %25 = arith.index_cast %c0_i32 : i32 to index
    %c0_15 = arith.constant 0 : index
    %c0_16 = arith.constant 0 : index
    %26 = vector.load %arg7[%25, %c0_15, %c0_16] : memref<2x1x128xf32, #tpu.memory_space<vmem>>, vector<1x1x128xf32>
    %27 = vector.shape_cast %26 : vector<1x1x128xf32> to vector<1x128xf32>
    %28 = vector.broadcast %27 : vector<1x128xf32> to vector<128x128xf32>
    %29 = arith.addf %24, %28 : vector<128x128xf32>
    %30 = arith.addf %29, %7 : vector<128x128xf32>
    %cst_17 = arith.constant 0.000000e+00 : f32
    %31 = vector.broadcast %cst_17 : f32 to vector<128x128xf32>
    %32 = arith.maximumf %30, %31 : vector<128x128xf32>
    %c1_i32 = arith.constant 1 : i32
    %33 = arith.truncf %32 : vector<128x128xf32> to vector<128x128xbf16>
    %34 = arith.index_cast %c1_i32 : i32 to index
    %c0_18 = arith.constant 0 : index
    %c0_19 = arith.constant 0 : index
    %35 = vector.load %arg4[%34, %c0_18, %c0_19] : memref<2x128x128xbf16, #tpu.memory_space<vmem>>, vector<1x128x128xbf16>
    %36 = vector.shape_cast %35 : vector<1x128x128xbf16> to vector<128x128xbf16>
    %cst_20 = arith.constant dense<0.000000e+00> : vector<128x128xf32>
    %37 = tpu.matmul %33, %36, %cst_20 {dimension_numbers = #tpu.dot_dimension_numbers<[1], [0], [0], [1], [0, 0, 1, 1], [], []>} : vector<128x128xbf16>, vector<128x128xbf16>, vector<128x128xf32> -> vector<128x128xf32>
    %38 = arith.index_cast %c1_i32 : i32 to index
    %c0_21 = arith.constant 0 : index
    %c0_22 = arith.constant 0 : index
    %39 = vector.load %arg5[%38, %c0_21, %c0_22] : memref<2x1x128xf32, #tpu.memory_space<vmem>>, vector<1x1x128xf32>
    %40 = vector.shape_cast %39 : vector<1x1x128xf32> to vector<1x128xf32>
    %41 = vector.broadcast %40 : vector<1x128xf32> to vector<128x128xf32>
    %42 = arith.addf %37, %41 : vector<128x128xf32>
    %cst_23 = arith.constant 0.000000e+00 : f32
    %43 = vector.broadcast %cst_23 : f32 to vector<128x128xf32>
    %44 = arith.maximumf %42, %43 : vector<128x128xf32>
    %45 = arith.truncf %44 : vector<128x128xf32> to vector<128x128xbf16>
    %46 = arith.index_cast %c1_i32 : i32 to index
    %c0_24 = arith.constant 0 : index
    %c0_25 = arith.constant 0 : index
    %47 = vector.load %arg6[%46, %c0_24, %c0_25] : memref<2x128x128xbf16, #tpu.memory_space<vmem>>, vector<1x128x128xbf16>
    %48 = vector.shape_cast %47 : vector<1x128x128xbf16> to vector<128x128xbf16>
    %cst_26 = arith.constant dense<0.000000e+00> : vector<128x128xf32>
    %49 = tpu.matmul %45, %48, %cst_26 {dimension_numbers = #tpu.dot_dimension_numbers<[1], [0], [0], [1], [0, 0, 1, 1], [], []>} : vector<128x128xbf16>, vector<128x128xbf16>, vector<128x128xf32> -> vector<128x128xf32>
    %50 = arith.index_cast %c1_i32 : i32 to index
    %c0_27 = arith.constant 0 : index
    %c0_28 = arith.constant 0 : index
    %51 = vector.load %arg7[%50, %c0_27, %c0_28] : memref<2x1x128xf32, #tpu.memory_space<vmem>>, vector<1x1x128xf32>
    %52 = vector.shape_cast %51 : vector<1x1x128xf32> to vector<1x128xf32>
    %53 = vector.broadcast %52 : vector<1x128xf32> to vector<128x128xf32>
    %54 = arith.addf %49, %53 : vector<128x128xf32>
    %55 = arith.addf %54, %32 : vector<128x128xf32>
    %cst_29 = arith.constant 0.000000e+00 : f32
    %56 = vector.broadcast %cst_29 : f32 to vector<128x128xf32>
    %57 = arith.maximumf %55, %56 : vector<128x128xf32>
    %c2_i32 = arith.constant 2 : i32
    %58 = arith.truncf %57 : vector<128x128xf32> to vector<128x128xbf16>
    %c0_30 = arith.constant 0 : index
    %c0_31 = arith.constant 0 : index
    %59 = vector.load %arg8[%c0_30, %c0_31] : memref<128x128xbf16, #tpu.memory_space<vmem>>, vector<128x128xbf16>
    %cst_32 = arith.constant dense<0.000000e+00> : vector<128x128xf32>
    %60 = tpu.matmul %58, %59, %cst_32 {dimension_numbers = #tpu.dot_dimension_numbers<[1], [0], [0], [1], [0, 0, 1, 1], [], []>} : vector<128x128xbf16>, vector<128x128xbf16>, vector<128x128xf32> -> vector<128x128xf32>
    %c0_33 = arith.constant 0 : index
    %c0_34 = arith.constant 0 : index
    %61 = vector.load %arg9[%c0_33, %c0_34] : memref<1x128xf32, #tpu.memory_space<vmem>>, vector<1x128xf32>
    %62 = vector.broadcast %61 : vector<1x128xf32> to vector<128x128xf32>
    %63 = arith.addf %60, %62 : vector<128x128xf32>
    %c0_35 = arith.constant 0 : index
    %c0_36 = arith.constant 0 : index
    %64 = vector.load %arg10[%c0_35, %c0_36] : memref<128x128xf32, #tpu.memory_space<vmem>>, vector<128x128xf32>
    tpu.vector_store %arg10[%c0_35, %c0_36], %63 {strides = array<i32>} : memref<128x128xf32, #tpu.memory_space<vmem>>, vector<128x128xf32>,
    return
  }
  func.func @transform_0(%arg0: i32) -> (i32, i32) {
    %c0_i32 = arith.constant 0 : i32
    %c0_i32_0 = arith.constant 0 : i32
    return %arg0, %c0_i32 : i32, i32
  }
  func.func @transform_1(%arg0: i32) -> (i32, i32) {
    %c0_i32 = arith.constant 0 : i32
    %c0_i32_0 = arith.constant 0 : i32
    %c0_i32_1 = arith.constant 0 : i32
    return %c0_i32, %c0_i32_0 : i32, i32
  }
  func.func @transform_2(%arg0: i32) -> (i32, i32) {
    %c0_i32 = arith.constant 0 : i32
    %c0_i32_0 = arith.constant 0 : i32
    %c0_i32_1 = arith.constant 0 : i32
    return %c0_i32, %c0_i32_0 : i32, i32
  }
  func.func @transform_3(%arg0: i32) -> (i32, i32, i32) {
    %c0_i32 = arith.constant 0 : i32
    %c0_i32_0 = arith.constant 0 : i32
    %c0_i32_1 = arith.constant 0 : i32
    %c0_i32_2 = arith.constant 0 : i32
    return %c0_i32, %c0_i32_0, %c0_i32_1 : i32, i32, i32
  }
  func.func @transform_4(%arg0: i32) -> (i32, i32, i32) {
    %c0_i32 = arith.constant 0 : i32
    %c0_i32_0 = arith.constant 0 : i32
    %c0_i32_1 = arith.constant 0 : i32
    %c0_i32_2 = arith.constant 0 : i32
    return %c0_i32, %c0_i32_0, %c0_i32_1 : i32, i32, i32
  }
  func.func @transform_5(%arg0: i32) -> (i32, i32, i32) {
    %c0_i32 = arith.constant 0 : i32
    %c0_i32_0 = arith.constant 0 : i32
    %c0_i32_1 = arith.constant 0 : i32
    %c0_i32_2 = arith.constant 0 : i32
    return %c0_i32, %c0_i32_0, %c0_i32_1 : i32, i32, i32
  }
  func.func @transform_6(%arg0: i32) -> (i32, i32, i32) {
    %c0_i32 = arith.constant 0 : i32
    %c0_i32_0 = arith.constant 0 : i32
    %c0_i32_1 = arith.constant 0 : i32
    %c0_i32_2 = arith.constant 0 : i32
    return %c0_i32, %c0_i32_0, %c0_i32_1 : i32, i32, i32
  }
  func.func @transform_7(%arg0: i32) -> (i32, i32) {
    %c0_i32 = arith.constant 0 : i32
    %c0_i32_0 = arith.constant 0 : i32
    %c0_i32_1 = arith.constant 0 : i32
    return %c0_i32, %c0_i32_0 : i32, i32
  }
  func.func @transform_8(%arg0: i32) -> (i32, i32) {
    %c0_i32 = arith.constant 0 : i32
    %c0_i32_0 = arith.constant 0 : i32
    %c0_i32_1 = arith.constant 0 : i32
    return %c0_i32, %c0_i32_0 : i32, i32
  }
  func.func @transform_9(%arg0: i32) -> (i32, i32) {
    %c0_i32 = arith.constant 0 : i32
    %c0_i32_0 = arith.constant 0 : i32
    return %arg0, %c0_i32 : i32, i32
  }
}

module attributes {stable_mosaic.version = 11 : i64} {
  func.func @_resident_kernel(%arg0: i32, %arg1: memref<128x128xbf16, #tpu.memory_space<vmem>>, %arg2: memref<128x128xbf16, #tpu.memory_space<vmem>>, %arg3: memref<1x128xf32, #tpu.memory_space<vmem>>, %arg4: memref<2x128x128xbf16, #tpu.memory_space<vmem>>, %arg5: memref<2x1x128xf32, #tpu.memory_space<vmem>>, %arg6: memref<2x128x128xbf16, #tpu.memory_space<vmem>>, %arg7: memref<2x1x128xf32, #tpu.memory_space<vmem>>, %arg8: memref<128x128xbf16, #tpu.memory_space<vmem>>, %arg9: memref<1x128xf32, #tpu.memory_space<vmem>>, %arg10: memref<128x128xf32, #tpu.memory_space<vmem>>) attributes {dimension_semantics = [#tpu.dimension_semantics<parallel>], iteration_bounds = array<i64: 2>, scalar_prefetch = 0 : i64, scratch_operands = 0 : i64, tpu.core_type = #tpu.core_type<tc>, window_params = [{transform_indices = @transform_0, window_bounds = array<i64: 128, 128>}, {pipeline_mode = #tpu.pipeline_mode<synchronous>, transform_indices = @transform_1, window_bounds = array<i64: 128, 128>}, {pipeline_mode = #tpu.pipeline_mode<synchronous>, transform_indices = @transform_2, window_bounds = array<i64: 1, 128>}, {pipeline_mode = #tpu.pipeline_mode<synchronous>, transform_indices = @transform_3, window_bounds = array<i64: 2, 128, 128>}, {pipeline_mode = #tpu.pipeline_mode<synchronous>, transform_indices = @transform_4, window_bounds = array<i64: 2, 1, 128>}, {pipeline_mode = #tpu.pipeline_mode<synchronous>, transform_indices = @transform_5, window_bounds = array<i64: 2, 128, 128>}, {pipeline_mode = #tpu.pipeline_mode<synchronous>, transform_indices = @transform_6, window_bounds = array<i64: 2, 1, 128>}, {pipeline_mode = #tpu.pipeline_mode<synchronous>, transform_indices = @transform_7, window_bounds = array<i64: 128, 128>}, {pipeline_mode = #tpu.pipeline_mode<synchronous>, transform_indices = @transform_8, window_bounds = array<i64: 1, 128>}, {transform_indices = @transform_9, window_bounds = array<i64: 128, 128>}]} {
    %c0 = arith.constant 0 : index
    %c0_0 = arith.constant 0 : index
    %0 = vector.load %arg1[%c0, %c0_0] : memref<128x128xbf16, #tpu.memory_space<vmem>>, vector<128x128xbf16>
    %c0_1 = arith.constant 0 : index
    %c0_2 = arith.constant 0 : index
    %1 = vector.load %arg2[%c0_1, %c0_2] : memref<128x128xbf16, #tpu.memory_space<vmem>>, vector<128x128xbf16>
    %cst = arith.constant dense<0.000000e+00> : vector<128x128xf32>
    %2 = tpu.matmul %0, %1, %cst {dimension_numbers = #tpu.dot_dimension_numbers<[1], [0], [0], [1], [0, 0, 1, 1], [], []>} : vector<128x128xbf16>, vector<128x128xbf16>, vector<128x128xf32> -> vector<128x128xf32>
    %c0_3 = arith.constant 0 : index
    %c0_4 = arith.constant 0 : index
    %3 = vector.load %arg3[%c0_3, %c0_4] : memref<1x128xf32, #tpu.memory_space<vmem>>, vector<1x128xf32>
    %4 = vector.broadcast %3 : vector<1x128xf32> to vector<128x128xf32>
    %5 = arith.addf %2, %4 : vector<128x128xf32>
    %cst_5 = arith.constant 0.000000e+00 : f32
    %6 = vector.broadcast %cst_5 : f32 to vector<128x128xf32>
    %7 = arith.maximumf %5, %6 : vector<128x128xf32>
    %c0_i32 = arith.constant 0 : i32
    %8 = arith.truncf %7 : vector<128x128xf32> to vector<128x128xbf16>
    %9 = arith.index_cast %c0_i32 : i32 to index
    %c0_6 = arith.constant 0 : index
    %c0_7 = arith.constant 0 : index
    %10 = vector.load %arg4[%9, %c0_6, %c0_7] : memref<2x128x128xbf16, #tpu.memory_space<vmem>>, vector<1x128x128xbf16>
    %11 = vector.shape_cast %10 : vector<1x128x128xbf16> to vector<128x128xbf16>
    %cst_8 = arith.constant dense<0.000000e+00> : vector<128x128xf32>
    %12 = tpu.matmul %8, %11, %cst_8 {dimension_numbers = #tpu.dot_dimension_numbers<[1], [0], [0], [1], [0, 0, 1, 1], [], []>} : vector<128x128xbf16>, vector<128x128xbf16>, vector<128x128xf32> -> vector<128x128xf32>
    %13 = arith.index_cast %c0_i32 : i32 to index
    %c0_9 = arith.constant 0 : index
    %c0_10 = arith.constant 0 : index
    %14 = vector.load %arg5[%13, %c0_9, %c0_10] : memref<2x1x128xf32, #tpu.memory_space<vmem>>, vector<1x1x128xf32>
    %15 = vector.shape_cast %14 : vector<1x1x128xf32> to vector<1x128xf32>
    %16 = vector.broadcast %15 : vector<1x128xf32> to vector<128x128xf32>
    %17 = arith.addf %12, %16 : vector<128x128xf32>
    %cst_11 = arith.constant 0.000000e+00 : f32
    %18 = vector.broadcast %cst_11 : f32 to vector<128x128xf32>
    %19 = arith.maximumf %17, %18 : vector<128x128xf32>
    %20 = arith.truncf %19 : vector<128x128xf32> to vector<128x128xbf16>
    %21 = arith.index_cast %c0_i32 : i32 to index
    %c0_12 = arith.constant 0 : index
    %c0_13 = arith.constant 0 : index
    %22 = vector.load %arg6[%21, %c0_12, %c0_13] : memref<2x128x128xbf16, #tpu.memory_space<vmem>>, vector<1x128x128xbf16>
    %23 = vector.shape_cast %22 : vector<1x128x128xbf16> to vector<128x128xbf16>
    %cst_14 = arith.constant dense<0.000000e+00> : vector<128x128xf32>
    %24 = tpu.matmul %20, %23, %cst_14 {dimension_numbers = #tpu.dot_dimension_numbers<[1], [0], [0], [1], [0, 0, 1, 1], [], []>} : vector<128x128xbf16>, vector<128x128xbf16>, vector<128x128xf32> -> vector<128x128xf32>
    %25 = arith.index_cast %c0_i32 : i32 to index
    %c0_15 = arith.constant 0 : index
    %c0_16 = arith.constant 0 : index
    %26 = vector.load %arg7[%25, %c0_15, %c0_16] : memref<2x1x128xf32, #tpu.memory_space<vmem>>, vector<1x1x128xf32>
    %27 = vector.shape_cast %26 : vector<1x1x128xf32> to vector<1x128xf32>
    %28 = vector.broadcast %27 : vector<1x128xf32> to vector<128x128xf32>
    %29 = arith.addf %24, %28 : vector<128x128xf32>
    %30 = arith.addf %29, %7 : vector<128x128xf32>
    %cst_17 = arith.constant 0.000000e+00 : f32
    %31 = vector.broadcast %cst_17 : f32 to vector<128x128xf32>
    %32 = arith.maximumf %30, %31 : vector<128x128xf32>
    %c1_i32 = arith.constant 1 : i32
    %33 = arith.truncf %32 : vector<128x128xf32> to vector<128x128xbf16>
    %34 = arith.index_cast %c1_i32 : i32 to index
    %c0_18 = arith.constant 0 : index
    %c0_19 = arith.constant 0 : index
    %35 = vector.load %arg4[%34, %c0_18, %c0_19] : memref<2x128x128xbf16, #tpu.memory_space<vmem>>, vector<1x128x128xbf16>
    %36 = vector.shape_cast %35 : vector<1x128x128xbf16> to vector<128x128xbf16>
    %cst_20 = arith.constant dense<0.000000e+00> : vector<128x128xf32>
    %37 = tpu.matmul %33, %36, %cst_20 {dimension_numbers = #tpu.dot_dimension_numbers<[1], [0], [0], [1], [0, 0, 1, 1], [], []>} : vector<128x128xbf16>, vector<128x128xbf16>, vector<128x128xf32> -> vector<128x128xf32>
    %38 = arith.index_cast %c1_i32 : i32 to index
    %c0_21 = arith.constant 0 : index
    %c0_22 = arith.constant 0 : index
    %39 = vector.load %arg5[%38, %c0_21, %c0_22] : memref<2x1x128xf32, #tpu.memory_space<vmem>>, vector<1x1x128xf32>
    %40 = vector.shape_cast %39 : vector<1x1x128xf32> to vector<1x128xf32>
    %41 = vector.broadcast %40 : vector<1x128xf32> to vector<128x128xf32>
    %42 = arith.addf %37, %41 : vector<128x128xf32>
    %cst_23 = arith.constant 0.000000e+00 : f32
    %43 = vector.broadcast %cst_23 : f32 to vector<128x128xf32>
    %44 = arith.maximumf %42, %43 : vector<128x128xf32>
    %45 = arith.truncf %44 : vector<128x128xf32> to vector<128x128xbf16>
    %46 = arith.index_cast %c1_i32 : i32 to index
    %c0_24 = arith.constant 0 : index
    %c0_25 = arith.constant 0 : index
    %47 = vector.load %arg6[%46, %c0_24, %c0_25] : memref<2x128x128xbf16, #tpu.memory_space<vmem>>, vector<1x128x128xbf16>
    %48 = vector.shape_cast %47 : vector<1x128x128xbf16> to vector<128x128xbf16>
    %cst_26 = arith.constant dense<0.000000e+00> : vector<128x128xf32>
    %49 = tpu.matmul %45, %48, %cst_26 {dimension_numbers = #tpu.dot_dimension_numbers<[1], [0], [0], [1], [0, 0, 1, 1], [], []>} : vector<128x128xbf16>, vector<128x128xbf16>, vector<128x128xf32> -> vector<128x128xf32>
    %50 = arith.index_cast %c1_i32 : i32 to index
    %c0_27 = arith.constant 0 : index
    %c0_28 = arith.constant 0 : index
    %51 = vector.load %arg7[%50, %c0_27, %c0_28] : memref<2x1x128xf32, #tpu.memory_space<vmem>>, vector<1x1x128xf32>
    %52 = vector.shape_cast %51 : vector<1x1x128xf32> to vector<1x128xf32>
    %53 = vector.broadcast %52 : vector<1x128xf32> to vector<128x128xf32>
    %54 = arith.addf %49, %53 : vector<128x128xf32>
    %55 = arith.addf %54, %32 : vector<128x128xf32>
    %cst_29 = arith.constant 0.000000e+00 : f32
    %56 = vector.broadcast %cst_29 : f32 to vector<128x128xf32>
    %57 = arith.maximumf %55, %56 : vector<128x128xf32>
    %c2_i32 = arith.constant 2 : i32
    %58 = arith.truncf %57 : vector<128x128xf32> to vector<128x128xbf16>
    %c0_30 = arith.constant 0 : index
    %c0_31 = arith.constant 0 : index
    %59 = vector.load %arg8[%c0_30, %c0_31] : memref<128x128xbf16, #tpu.memory_space<vmem>>, vector<128x128xbf16>
    %cst_32 = arith.constant dense<0.000000e+00> : vector<128x128xf32>
    %60 = tpu.matmul %58, %59, %cst_32 {dimension_numbers = #tpu.dot_dimension_numbers<[1], [0], [0], [1], [0, 0, 1, 1], [], []>} : vector<128x128xbf16>, vector<128x128xbf16>, vector<128x128xf32> -> vector<128x128xf32>
    %c0_33 = arith.constant 0 : index
    %c0_34 = arith.constant 0 : index
    %61 = vector.load %arg9[%c0_33, %c0_34] : memref<1x128xf32, #tpu.memory_space<vmem>>, vector<1x128xf32>
    %62 = vector.broadcast %61 : vector<1x128xf32> to vector<128x128xf32>
    %63 = arith.addf %60, %62 : vector<128x128xf32>
    %c0_35 = arith.constant 0 : index
    %c0_36 = arith.constant 0 : index
    %64 = vector.load %arg10[%c0_35, %c0_36] : memref<128x128xf32, #tpu.memory_space<vmem>>, vector<128x128xf32>
    tpu.vector_store %arg10[%c0_35, %c0_36], %63 {strides = array<i32>} : memref<128x128xf32, #tpu.memory_space<vmem>>, vector<128x128xf32>,
    return
  }
  func.func @transform_0(%arg0: i32) -> (i32, i32) {
    %c0_i32 = arith.constant 0 : i32
    %c0_i32_0 = arith.constant 0 : i32
    return %arg0, %c0_i32 : i32, i32
  }
  func.func @transform_1(%arg0: i32) -> (i32, i32) {
    %c0_i32 = arith.constant 0 : i32
    %c0_i32_0 = arith.constant 0 : i32
    %c0_i32_1 = arith.constant 0 : i32
    return %c0_i32, %c0_i32_0 : i32, i32
  }
  func.func @transform_2(%arg0: i32) -> (i32, i32) {
    %c0_i32 = arith.constant 0 : i32
    %c0_i32_0 = arith.constant 0 : i32
    %c0_i32_1 = arith.constant 0 : i32
    return %c0_i32, %c0_i32_0 : i32, i32
  }
  func.func @transform_3(%arg0: i32) -> (i32, i32, i32) {
    %c0_i32 = arith.constant 0 : i32
    %c0_i32_0 = arith.constant 0 : i32
    %c0_i32_1 = arith.constant 0 : i32
    %c0_i32_2 = arith.constant 0 : i32
    return %c0_i32, %c0_i32_0, %c0_i32_1 : i32, i32, i32
  }
  func.func @transform_4(%arg0: i32) -> (i32, i32, i32) {
    %c0_i32 = arith.constant 0 : i32
    %c0_i32_0 = arith.constant 0 : i32
    %c0_i32_1 = arith.constant 0 : i32
    %c0_i32_2 = arith.constant 0 : i32
    return %c0_i32, %c0_i32_0, %c0_i32_1 : i32, i32, i32
  }
  func.func @transform_5(%arg0: i32) -> (i32, i32, i32) {
    %c0_i32 = arith.constant 0 : i32
    %c0_i32_0 = arith.constant 0 : i32
    %c0_i32_1 = arith.constant 0 : i32
    %c0_i32_2 = arith.constant 0 : i32
    return %c0_i32, %c0_i32_0, %c0_i32_1 : i32, i32, i32
  }
  func.func @transform_6(%arg0: i32) -> (i32, i32, i32) {
    %c0_i32 = arith.constant 0 : i32
    %c0_i32_0 = arith.constant 0 : i32
    %c0_i32_1 = arith.constant 0 : i32
    %c0_i32_2 = arith.constant 0 : i32
    return %c0_i32, %c0_i32_0, %c0_i32_1 : i32, i32, i32
  }
  func.func @transform_7(%arg0: i32) -> (i32, i32) {
    %c0_i32 = arith.constant 0 : i32
    %c0_i32_0 = arith.constant 0 : i32
    %c0_i32_1 = arith.constant 0 : i32
    return %c0_i32, %c0_i32_0 : i32, i32
  }
  func.func @transform_8(%arg0: i32) -> (i32, i32) {
    %c0_i32 = arith.constant 0 : i32
    %c0_i32_0 = arith.constant 0 : i32
    %c0_i32_1 = arith.constant 0 : i32
    return %c0_i32, %c0_i32_0 : i32, i32
  }
  func.func @transform_9(%arg0: i32) -> (i32, i32) {
    %c0_i32 = arith.constant 0 : i32
    %c0_i32_0 = arith.constant 0 : i32
    return %arg0, %c0_i32 : i32, i32
  }
}

</mosaic_0001>

<bundles_post_ra>
// kernel: tpu_custom_call.1
= control target key start
LH: loop header
LB: loop body
LE: loop exit
PB: predicated region body
PF: predicated region fallthrough
CT: control target
= control target key end

     0   :  { %s2805_s0 = inlined_call_operand.hbm [shape: bf16[256,128], index: 0, kind: input, shape index: {}]   ;;  %s2806_s1 = inlined_call_operand.hbm [shape: bf16[128,128], index: 1, kind: input, shape index: {}]   ;;  %s2807_s2 = inlined_call_operand.hbm [shape: f32[1,128], index: 2, kind: input, shape index: {}]   ;;  %s2808_s3 = inlined_call_operand.hbm [shape: bf16[2,128,128], index: 3, kind: input, shape index: {}]   ;;  %s2809_s4 = inlined_call_operand.vmem [shape: f32[2,1,128], index: 4, kind: input, shape index: {}]   ;;  %s2810_s5 = inlined_call_operand.hbm [shape: bf16[2,128,128], index: 5, kind: input, shape index: {}]   ;;  %s2811_s6 = inlined_call_operand.vmem [shape: f32[2,1,128], index: 6, kind: input, shape index: {}]   ;;  %s2812_s7 = inlined_call_operand.hbm [shape: bf16[128,128], index: 7, kind: input, shape index: {}]   ;;  %s2813_s8 = inlined_call_operand.vmem [shape: f32[1,128], index: 8, kind: input, shape index: {}]   ;;  %s2814_s9 = inlined_call_operand.hbm [shape: f32[256,128], index: 9, kind: output, shape index: {}]  }
   0x1   :  { %2817 = sst [smem:[#allocation19_spill]] %s2806_s1 }
   0x2   :  { %2818 = sst [smem:[#allocation20_spill]] %s2807_s2 }
   0x3   :  { %2819 = sst [smem:[#allocation21_spill]] %s2808_s3 }
   0x4   :  { %14 = vsyncpa [#allocation3], 0 }
   0x5   :  { %16 = vsyncpa [#allocation3 + $0x1], 0 }
   0x6   :  { %17 = vsyncpa [#allocation6], 0 }
   0x7   :  { %18 = vsyncpa [#allocation9], 0 }
   0x8   :  { %19 = vsyncpa [#allocation12], 0 }
   0x9   :  { %20 = vsyncpa [#allocation4], 0 }
   0xa   :  { %22 = vsyncpa [#allocation4 + $0x1], 0  ;;  %s2261_s30 = smov 0   ;;  %s2263_s10 = smov 0  }
   0xb   :  { %s2265_s11 = smov 0   ;;  %s2267_s12 = smov 0  }
   0xc LB: > { %s2820_s1 = sld [smem:[#allocation19_spill]]  ;;  %s2285_s16 = sadd.s32 4294967295, %s2200_s12   ;;  %s2200_s12 = sphi %s2267_s12, %s2835_s12   ;;  %s2196_s11 = sphi %s2265_s11, %s2834_s11   ;;  %s2192_s10 = sphi %s2263_s10, %s2833_s10   ;;  %s2188_s30 = sphi %s2261_s30, %s2832_s30  }
   0xd   : > { %p1512_p0 = scmp.ge.s32.totalorder %s2200_s12, 1  ;;  %p49_p1 = scmp.eq.s32.totalorder %s2285_s16, 0 }
   0xe   : > { %p253_p2 = scmp.lt.s32.totalorder %s2200_s12, 3  ;;  %s2202_s18 = smov [#allocation5]  }
   0xf   : > { %s266_s19 = sshll.u32 %s2202_s18, 4  ;;  %s2822_s3 = sld [smem:[#allocation21_spill]]  ;;  %s267_s19 = int_to_ptr.vmem [resolvable:$true] %s266_s19 }
  0x10   : > { %p2290_p3 = pnand %p1512_p0, %p253_p2  ;;  %s2824_s2 = sld [smem:[#allocation20_spill]] }
  0x11   : > { %s2203_s27 = smov [#allocation8]   ;;  %s2815_s29 = smov 64  }
  0x12   : > { %s264_s15 = sshll.u32 %s2820_s1, 4  ;;  %p1859_p4 = pneg %p2290_p3  ;;  %s265_s15 = int_to_ptr.hbm [resolvable:$true] %s264_s15 }
  0x13   : > { %s292_s28 = sshll.u32 %s2203_s27, 4  ;;  %s2816_s13 = smov 4   ;;  %s293_s28 = int_to_ptr.vmem [resolvable:$true] %s292_s28 }
  0x14   : > { %p2302_p6 = pnand %p1859_p4, %p49_p1  ;;  %s307_s20 = sshll.u32 %s2810_s5, 4  ;;  %s308_s20 = int_to_ptr.hbm [resolvable:$true] %s307_s20 }
  0x15   : > { %s290_s22 = sshll.u32 %s2822_s3, 4  ;;  %s2206_s21 = smov [#allocation7]   ;;  %s291_s22 = int_to_ptr.hbm [resolvable:$true] %s290_s22 }
  0x16   : > { %s279_s26 = sshll.u32 %s2824_s2, 4  ;;  %s281_s24 = sshll.u32 %s2206_s21, 4  ;;  %s280_s26 = int_to_ptr.hbm [resolvable:$true] %s279_s26  ;;  %s282_s24 = int_to_ptr.vmem [resolvable:$true] %s281_s24 }
  0x17   : > { %1862 = dma.hbm_to_vmem [thread:$0]  (!%p2302_p6), %s265_s15, 1024, %s267_s19, [#allocation6], %s2815_s29, %s2815_s29, %s2816_s13  }
  0x18   : > { %1868 = dma.hbm_to_vmem [thread:$0]  (!%p2302_p6), %s291_s22, 2048, %s293_s28, [#allocation9], %s2815_s29, %s2815_s29, %s2816_s13  }
  0x19   : > { %1865 = dma.hbm_to_vmem [thread:$0]  (!%p2302_p6), %s280_s26, 16, %s282_s24, [#allocation6]  }
  0x1a   : > { %s2207_s15 = smov [#allocation10]   ;;  %s324_s27 = sshll.u32 %s2812_s7, 4  ;;  %s325_s27 = int_to_ptr.hbm [resolvable:$true] %s324_s27 }
  0x1b   : > { %s309_s19 = sshll.u32 %s2207_s15, 4  ;;  %s2208_s26 = smov [#allocation11]   ;;  %s310_s19 = int_to_ptr.vmem [resolvable:$true] %s309_s19 }
  0x1c   : > { %1871 = dma.hbm_to_vmem [thread:$0]  (!%p2302_p6), %s308_s20, 2048, %s310_s19, [#allocation9], %s2815_s29, %s2815_s29, %s2816_s13  }
  0x1d   : > { %s326_s28 = sshll.u32 %s2208_s26, 4  ;;  %s1511_s14 = sadd.s32 4294967294, %s2200_s12   ;;  %s327_s28 = int_to_ptr.vmem [resolvable:$true] %s326_s28 }
  0x1e   : > { %1874 = dma.hbm_to_vmem [thread:$0]  (!%p2302_p6), %s325_s27, 1024, %s327_s28, [#allocation12], %s2815_s29, %s2815_s29, %s2816_s13  }
  0x1f   : > { %s2339_s18 = sadd.s32 1, %s2200_s12   ;;  %s35_s21 = sadd.s32 1, %s2196_s11 }
  0x20   : > { %s32_s24 = ssub.s32 %s2200_s12, %s2339_s18  ;;  %p42_p7 = scmp.ne.s32.totalorder %s2196_s11, %s2192_s10 }
  0x21   : > { %p33_p8 = scmp.eq.s32.totalorder %s32_s24, 0  ;;  %p43_p9 = scmp.eq.s32.totalorder %s2200_s12, 0 }
  0x22   : > { %p48_p10 = scmp.ne.s32.totalorder %s2192_s10, %s2188_s30  ;;  %p240_p11 = scmp.eq.s32.totalorder %s2285_s16, 1 }
  0x23   : > { %s2351_s20 = scalar_select %p33_p8, %s2196_s11, %s35_s21  }
  0x24   : > { %p2355_p12 = por %p49_p1, %p48_p10  ;;  %p2359_p13 = por %p240_p11, %p42_p7 }
  0x25   : > { %p246_p0 = scmp.eq.s32.totalorder %s1511_s14, 1  ;;  %p44_p2 = por %p43_p9, %p42_p7 }
  0x26   : > { %s343_s19 = sand.u32 1, %s2196_s11   ;;  %p1888_p6 = scmp.lt.s32.totalorder %s2200_s12, 2 }
  0x27   : > { %p2364_p4 = por %p246_p0, %p48_p10  ;;  %s1519_s25 = sshll.u32 %s343_s19, 6 }
  0x28   : > { %s1761_s27 = sshll.u32 %s2200_s12, 6  ;;  %s347_s29 = scalar_lea.vmem [#allocation2], %s1519_s25 }
  0x29   : > { %s352_s21 = scalar_lea.hbm %s2805_s0, %s1761_s27  ;;  %s355_s13 = sshll.u32 %s347_s29, 4  ;;  %s356_s13 = int_to_ptr.vmem [resolvable:$true] %s355_s13 }
  0x2a   : > { %s353_s24 = sshll.u32 %s352_s21, 4  ;;  %p2373_p8 = pnand %p1888_p6, %p44_p2  ;;  %s354_s24 = int_to_ptr.hbm [resolvable:$true] %s353_s24 }
  0x2b   : > { %s344_s1 = scalar_lea.sflag [#allocation3], %s343_s19  ;;  %s2092_s2 = sshra.s32 %s354_s24, 4  ;;  %s2093_s2 = int_to_ptr.hbm [resolvable:$true] %s2092_s2 }
  0x2c   : > { %s2094_s3 = scalar_lea.hbm %s2093_s2, 64  ;;  %p2096_p9 = pneg %p2373_p8 }
  0x2d   : > { %p2095_p7 = scmp.ne.s32.totalorder %s2093_s2, %s2094_s3  ;;  %s2099_s29 = scalar_lea.hbm %s2805_s0, 128 }
  0x2e   : > { %p2100_p0 = scmp.lt.s32.totalorder %s2093_s2, %s2805_s0  ;;  %p2101_p2 = scmp.lt.s32.totalorder %s2099_s29, %s2094_s3 }
  0x2f   : > { %p2097_p10 = pnand %p2096_p9, %p2095_p7 }
  0x30   : > { %p2102_p6 = por %p2101_p2, %p2100_p0 }
  0x31   : > { %p2098_p11 = pneg %p2097_p10 }
  0x33   : > { %p2103_p5 = pnand %p2102_p6, %p2098_p11 }
  0x35   : > { %2106 = shalt.err (!%p2103_p5)
}
  0x36   : > { %s2829_s19 = smov 4   ;;  %s2830_s21 = smov 64  }
  0x37   : > { %1878 = dma.hbm_to_vmem [thread:$0]  (!%p2373_p8), %s354_s24, 1024, %s356_s13, %s344_s1, %s2830_s21, %s2830_s21, %s2829_s19  }
  0x38   : > { %367 = sbr.rel (%p2290_p3) target bundleno = 1068 (0x42c), region = 56  ;;  %s2393_s27 = sand.u32 (!%p2290_p3), 1, %s2192_s10  }
  0x39   : > { %s1523_s2 = sshll.u32 (!%p2290_p3), %s2393_s27, 6  ;;  %s370_s3 = scalar_lea.sflag (!%p2290_p3), [#allocation3], %s2393_s27 }
  0x3a   : > { %s2397_s26 = scalar_lea.vmem (!%p2290_p3), [#allocation2], %s1523_s2 }
  0x3d   : > { %2167 = dma.done.wait (%p2355_p12), %s370_s3, 1024  }
  0x3e   : > { %2169 = vsyncadd (%p2355_p12), %s370_s3, 4294966272 }
  0x3f   : > { %2171 = dma.done.wait (%p49_p1), [#allocation6], 1040  }
  0x40   : > { %2173 = vsyncadd (%p49_p1), [#allocation6], 4294966256 }
  0x41   : > { %2175 = dma.done.wait (%p49_p1), [#allocation9], 4096  }
  0x42   : > { %2177 = vsyncadd (%p49_p1), [#allocation9], 4294963200 }
  0x43   : > { %2179 = dma.done.wait (%p49_p1), [#allocation12], 1024  }
  0x44   : > { %2181 = vsyncadd (%p49_p1), [#allocation12], 4294966272  ;;  %v1777_v0 = vld [vmem:[#allocation5 + $0x38] sm:$0xff]  ;;  %v1776_v1 = vld [vmem:[#allocation5 + $0x30] sm:$0xff]  ;;  %s1529_s28 = sshll.u32 %s2393_s27, 7  ;;  %s1818_s3 = sshll.u32 %s2285_s16, 7 }
  0x45   : > { %568 = vmatpush.bf16.msra.mxu0 %v1777_v0  ;;  %1819 = vmatpush.bf16.msra.mxu2 %v1777_v0  ;;  %v1775_v2 = vld [vmem:[#allocation5 + $0x28] sm:$0xff]  ;;  %v1774_v3 = vld [vmem:[#allocation5 + $0x20] sm:$0xff]  ;;  %v1773_v4 = vld [vmem:[#allocation5 + $0x18] sm:$0xff]  ;;  %s2753_s2 = scalar_lea.vmem [#allocation13], %s1529_s28  ;;  %s1386_s17 = scalar_lea.hbm %s2814_s9, %s1818_s3 }
  0x46   : > { %v1772_v5 = vld [vmem:[#allocation5 + $0x10] sm:$0xff]  ;;  %v1771_v6 = vld [vmem:[#allocation5 + $0x8] sm:$0xff]  ;;  %v1770_v7 = vld [vmem:[#allocation5] sm:$0xff]  ;;  %s1387_s13 = sshll.u32 %s2753_s2, 4  ;;  %s1389_s23 = sshll.u32 %s1386_s17, 4  ;;  %s1388_s13 = int_to_ptr.vmem [resolvable:$true] %s1387_s13  ;;  %s1390_s23 = int_to_ptr.hbm [resolvable:$true] %s1389_s23 }
  0x47   : > { %v1762_v8 = vld [vmem:[%s2397_s26] sm:$0xff]  ;;  %v1763_v10 = vld [vmem:[%s2397_s26 + $0x8] sm:$0xff]  ;;  %v1784_v13 = vld [vmem:[#allocation8 + $0x30] sm:$0xff]  ;;  %s1375_s24 = scalar_lea.sflag [#allocation4], %s2393_s27  ;;  %s2136_s14 = sshra.s32 %s1390_s23, 4  ;;  %s2137_s14 = int_to_ptr.hbm [resolvable:$true] %s2136_s14 }
  0x48   : > { %v1766_v9 = vld [vmem:[%s2397_s26 + $0x20] sm:$0xff]  ;;  %v1767_v11 = vld [vmem:[%s2397_s26 + $0x28] sm:$0xff]  ;;  %v1764_v15 = vld [vmem:[%s2397_s26 + $0x10] sm:$0xff]  ;;  %s2138_s29 = scalar_lea.hbm %s2137_s14, 128  ;;  %s2142_s28 = scalar_lea.hbm %s2814_s9, 256 }
  0x49   : > { %569 = vmatpush.bf16.msra.mxu0 %v1776_v1  ;;  %1820 = vmatpush.bf16.msra.mxu2 %v1776_v1  ;;  %v1785_v12 = vld [vmem:[#allocation8 + $0x38] sm:$0xff]  ;;  %v1783_v14 = vld [vmem:[#allocation8 + $0x28] sm:$0xff]  ;;  %v1782_v16 = vld [vmem:[#allocation8 + $0x20] sm:$0xff]  ;;  %p2139_p1 = scmp.ne.s32.totalorder %s2137_s14, %s2138_s29  ;;  %p2143_p12 = scmp.lt.s32.totalorder %s2137_s14, %s2814_s9 }
  0x4a   : > { %709 = vmatpush.bf16.msra.mxu1 %v1785_v12  ;;  %1827 = vmatpush.bf16.msra.mxu3 %v1785_v12  ;;  %v1768_v17 = vld [vmem:[%s2397_s26 + $0x30] sm:$0xff]  ;;  %v1765_v18 = vld [vmem:[%s2397_s26 + $0x18] sm:$0xff]  ;;  %v1778_v23 = vld [vmem:[#allocation8] sm:$0xff]  ;;  %p2144_p8 = scmp.lt.s32.totalorder %s2142_s28, %s2138_s29 }
  0x4b   : > { %v1769_v19 = vld [vmem:[%s2397_s26 + $0x38] sm:$0xff]  ;;  %v1779_v22 = vld [vmem:[#allocation8 + $0x8] sm:$0xff]  ;;  %v2423_v25 = vld [vmem:[#allocation7] ss:$0 sm:$0xff]  ;;  %p2140_p3 = pnand %p2139_p1, %p2359_p13 }
  0x4c   : > { %v1781_v20 = vld [vmem:[#allocation8 + $0x18] sm:$0xff]  ;;  %v1780_v21 = vld [vmem:[#allocation8 + $0x10] sm:$0xff]  ;;  %v1791_v59 = vld [vmem:[#allocation10 + $0x28] sm:$0xff]  ;;  %p2145_p7 = por %p2144_p8, %p2143_p12 }
  0x4d   : > { %570 = vmatpush.bf16.msra.mxu0 %v1775_v2  ;;  %1821 = vmatpush.bf16.msra.mxu2 %v1775_v2  ;;  %v1793_v48 = vld [vmem:[#allocation10 + $0x38] sm:$0xff]  ;;  %v1792_v54 = vld [vmem:[#allocation10 + $0x30] sm:$0xff]  ;;  %v1790_v63 = vld [vmem:[#allocation10 + $0x20] sm:$0xff]  ;;  %p2141_p5 = pneg %p2140_p3 }
  0x4e   : > { %710 = vmatpush.bf16.msra.mxu1 %v1784_v13  ;;  %1828 = vmatpush.bf16.msra.mxu3 %v1784_v13  ;;  %v1789_v2 = vld [vmem:[#allocation10 + $0x18] sm:$0xff] }
  0x4f   : > { %p2146_p9 = pnand %p2145_p7, %p2141_p5 }
  0x51   : > { %571 = vmatpush.bf16.msra.mxu0 %v1774_v3  ;;  %1822 = vmatpush.bf16.msra.mxu2 %v1774_v3 }
  0x52   : > { %711 = vmatpush.bf16.msra.mxu1 %v1783_v14  ;;  %1829 = vmatpush.bf16.msra.mxu3 %v1783_v14 }
  0x55   : > { %572 = vmatpush.bf16.msra.mxu0 %v1773_v4  ;;  %1823 = vmatpush.bf16.msra.mxu2 %v1773_v4 }
  0x56   : > { %712 = vmatpush.bf16.msra.mxu1 %v1782_v16  ;;  %1830 = vmatpush.bf16.msra.mxu3 %v1782_v16 }
  0x59   : > { %573 = vmatpush.bf16.msra.mxu0 %v1772_v5  ;;  %1824 = vmatpush.bf16.msra.mxu2 %v1772_v5 }
  0x5a   : > { %713 = vmatpush.bf16.msra.mxu1 %v1781_v20  ;;  %1831 = vmatpush.bf16.msra.mxu3 %v1781_v20 }
  0x5d   : > { %574 = vmatpush.bf16.msra.mxu0 %v1771_v6  ;;  %1825 = vmatpush.bf16.msra.mxu2 %v1771_v6 }
  0x5e   : > { %714 = vmatpush.bf16.msra.mxu1 %v1780_v21  ;;  %1832 = vmatpush.bf16.msra.mxu3 %v1780_v21 }
  0x61   : > { %575 = vmatpush.bf16.msra.mxu0 %v1770_v7  ;;  %1826 = vmatpush.bf16.msra.mxu2 %v1770_v7  ;;  %v1788_v7 = vld [vmem:[#allocation10 + $0x10] sm:$0xff] }
  0x62   : > { %715 = vmatpush.bf16.msra.mxu1 %v1779_v22  ;;  %1833 = vmatpush.bf16.msra.mxu3 %v1779_v22 }
  0x64   : > { %576 = vmatmul.bf16.vlgmr.msra.gmra.mxu0 %v1762_v8  ;;  %596 = vmatmul.bf16.vlgmr.msra.gmra.mxu2 %v1766_v9 }
  0x65   : > { %850 = vmatpush.bf16.msrb.mxu2 %v1793_v48 }
  0x66   : > { %716 = vmatpush.bf16.msra.mxu1 %v1778_v23  ;;  %1834 = vmatpush.bf16.msra.mxu3 %v1778_v23 }
  0x69   : > { %851 = vmatpush.bf16.msrb.mxu2 %v1792_v54 }
  0x6d   : > { %852 = vmatpush.bf16.msrb.mxu2 %v1791_v59 }
  0x71   : > { %853 = vmatpush.bf16.msrb.mxu2 %v1790_v63 }
  0x74   : > { %581 = vmatmul.bf16.gmra.mxu0 %v1763_v10  ;;  %601 = vmatmul.bf16.gmra.mxu2 %v1767_v11  ;;  %v1787_v11 = vld [vmem:[#allocation10 + $0x8] sm:$0xff] }
  0x75   : > { %854 = vmatpush.bf16.msrb.mxu2 %v1789_v2 }
  0x79   : > { %855 = vmatpush.bf16.msrb.mxu2 %v1788_v7 }
  0x7d   : > { %856 = vmatpush.bf16.msrb.mxu2 %v1787_v11 }
  0x84   : > { %586 = vmatmul.bf16.gmra.mxu0 %v1764_v15  ;;  %606 = vmatmul.bf16.gmra.mxu2 %v1768_v17 }
  0x94   : > { %591 = vmatmul.bf16.gmra.mxu0 %v1765_v18  ;;  %611 = vmatmul.bf16.gmra.mxu2 %v1769_v19 }
  0xe1   : > { %v577_v24 = vpop.f32.mrf.mxu0 }
  0xe2   : > { %v2426_v26 = vadd.f32 %v2423_v25, %v577_v24  ;;  %v1786_v24 = vld [vmem:[#allocation10] sm:$0xff] }
  0xe3   : > { %857 = vmatpush.bf16.msrb.mxu2 %v1786_v24  ;;  %v1801_v24 = vld [vmem:[#allocation8 + $0x78] sm:$0xff] }
  0xe4   : > { %v617_v30 = vmax.f32 %v2426_v26, 0.0  ;;  %1009 = vmatpush.bf16.msrb.mxu3 %v1801_v24 }
  0xe7   : > { %v597_v29 = vpop.f32.mrf.mxu2 }
  0xe8   : > { %v2438_v33 = vadd.f32 %v2423_v25, %v597_v29  ;;  %v2524_v29 = vld [vmem:[%s2809_s4] ss:$0 sm:$0xff] }
  0xe9   : > { %v579_v27 = vpop.f32.mrf.mxu0 }
  0xea   : > { %v2429_v28 = vadd.f32 %v2423_v25, %v579_v27  ;;  %v625_v36 = vmax.f32 %v2438_v33, 0.0 }
  0xec   : > { %v618_v31 = vmax.f32 %v2429_v28, 0.0 }
  0xee   : > { %v633_v32 = vpack.c.bf16 %v618_v31, %v617_v30 }
  0xef   : > { %v599_v35 = vpop.f32.mrf.mxu2 }
  0xf0   : > { %717 = vmatmul.bf16.vlgmr.msra.gmra.mxu1 %v633_v32  ;;  %v2442_v37 = vadd.f32 %v2423_v25, %v599_v35 }
  0xf1   : > { %v582_v34 = vpop.f32.mrf.mxu0 }
  0xf2   : > { %v626_v38 = vmax.f32 %v2442_v37, 0.0  ;;  %v2446_v39 = vadd.f32 %v2423_v25, %v582_v34 }
  0xf4   : > { %v637_v40 = vpack.c.bf16 %v626_v38, %v625_v36  ;;  %v619_v44 = vmax.f32 %v2446_v39, 0.0 }
  0xf6   : > { %737 = vmatmul.bf16.vlgmr.msra.gmra.mxu3 %v637_v40 }
  0xf7   : > { %v602_v43 = vpop.f32.mrf.mxu2 }
  0xf8   : > { %v2462_v47 = vadd.f32 %v2423_v25, %v602_v43 }
  0xf9   : > { %v584_v41 = vpop.f32.mrf.mxu0 }
  0xfa   : > { %v2453_v42 = vadd.f32 %v2423_v25, %v584_v41  ;;  %v627_v51 = vmax.f32 %v2462_v47, 0.0 }
  0xfc   : > { %v620_v45 = vmax.f32 %v2453_v42, 0.0 }
  0xfe   : > { %v634_v46 = vpack.c.bf16 %v620_v45, %v619_v44 }
  0xff   : > { %v604_v50 = vpop.f32.mrf.mxu2 }
 0x100   : > { %722 = vmatmul.bf16.gmra.mxu1 %v634_v46  ;;  %v2466_v52 = vadd.f32 %v2423_v25, %v604_v50 }
 0x101   : > { %v587_v49 = vpop.f32.mrf.mxu0 }
 0x102   : > { %v628_v53 = vmax.f32 %v2466_v52, 0.0  ;;  %v2470_v55 = vadd.f32 %v2423_v25, %v587_v49 }
 0x104   : > { %v638_v56 = vpack.c.bf16 %v628_v53, %v627_v51  ;;  %v621_v61 = vmax.f32 %v2470_v55, 0.0 }
 0x106   : > { %742 = vmatmul.bf16.gmra.mxu3 %v638_v56 }
 0x107   : > { %v607_v60 = vpop.f32.mrf.mxu2 }
 0x108   : > { %v2486_v1 = vadd.f32 %v2423_v25, %v607_v60 }
 0x109   : > { %v589_v57 = vpop.f32.mrf.mxu0 }
 0x10a   : > { %v2477_v58 = vadd.f32 %v2423_v25, %v589_v57  ;;  %v629_v5 = vmax.f32 %v2486_v1, 0.0 }
 0x10c   : > { %v622_v62 = vmax.f32 %v2477_v58, 0.0 }
 0x10e   : > { %v635_v0 = vpack.c.bf16 %v622_v62, %v621_v61 }
 0x10f   : > { %v609_v4 = vpop.f32.mrf.mxu2 }
 0x110   : > { %727 = vmatmul.bf16.gmra.mxu1 %v635_v0  ;;  %v2490_v6 = vadd.f32 %v2423_v25, %v609_v4 }
 0x111   : > { %v592_v3 = vpop.f32.mrf.mxu0 }
 0x112   : > { %v630_v8 = vmax.f32 %v2490_v6, 0.0  ;;  %v2494_v9 = vadd.f32 %v2423_v25, %v592_v3 }
 0x114   : > { %v639_v10 = vpack.c.bf16 %v630_v8, %v629_v5  ;;  %v623_v15 = vmax.f32 %v2494_v9, 0.0 }
 0x116   : > { %747 = vmatmul.bf16.gmra.mxu3 %v639_v10 }
 0x117   : > { %v612_v14 = vpop.f32.mrf.mxu2 }
 0x118   : > { %v2510_v18 = vadd.f32 %v2423_v25, %v612_v14 }
 0x119   : > { %v594_v12 = vpop.f32.mrf.mxu0 }
 0x11a   : > { %v2501_v13 = vadd.f32 %v2423_v25, %v594_v12  ;;  %v631_v20 = vmax.f32 %v2510_v18, 0.0 }
 0x11c   : > { %v624_v16 = vmax.f32 %v2501_v13, 0.0 }
 0x11e   : > { %v636_v17 = vpack.c.bf16 %v624_v16, %v623_v15 }
 0x11f   : > { %v614_v19 = vpop.f32.mrf.mxu2 }
 0x120   : > { %732 = vmatmul.bf16.gmra.mxu1 %v636_v17  ;;  %v2514_v21 = vadd.f32 %v2423_v25, %v614_v19 }
 0x122   : > { %v632_v22 = vmax.f32 %v2514_v21, 0.0 }
 0x124   : > { %v640_v23 = vpack.c.bf16 %v632_v22, %v631_v20 }
 0x126   : > { %752 = vmatmul.bf16.gmra.mxu3 %v640_v23 }
 0x16d   : > { %v718_v27 = vpop.f32.mrf.mxu1 }
 0x16e   : > { %v719_v32 = vadd.f32 %v2524_v29, %v718_v27 }
 0x170   : > { %v758_v35 = vmax.f32 %v719_v32, 0.0  ;;  %v1800_v32 = vld [vmem:[#allocation8 + $0x70] sm:$0xff] }
 0x171   : > { %1010 = vmatpush.bf16.msrb.mxu3 %v1800_v32  ;;  %v1794_v32 = vld [vmem:[#allocation8 + $0x40] sm:$0xff] }
 0x175   : > { %v720_v25 = vpop.f32.mrf.mxu1 }
 0x176   : > { %v721_v34 = vadd.f32 %v2524_v29, %v720_v25 }
 0x178   : > { %v759_v40 = vmax.f32 %v721_v34, 0.0 }
 0x179   : > { %v738_v3 = vpop.f32.mrf.mxu3 }
 0x17a   : > { %v774_v41 = vpack.c.bf16 %v759_v40, %v758_v35  ;;  %v739_v25 = vadd.f32 %v2524_v29, %v738_v3 }
 0x17c   : > { %858 = vmatmul.bf16.vlgmr.msrb.gmra.mxu2 %v774_v41  ;;  %v766_v35 = vmax.f32 %v739_v25, 0.0 }
 0x17d   : > { %v723_v43 = vpop.f32.mrf.mxu1 }
 0x17e   : > { %v724_v46 = vadd.f32 %v2524_v29, %v723_v43 }
 0x180   : > { %v760_v50 = vmax.f32 %v724_v46, 0.0  ;;  %v1799_v46 = vld [vmem:[#allocation8 + $0x68] sm:$0xff] }
 0x181   : > { %v740_v10 = vpop.f32.mrf.mxu3  ;;  %1011 = vmatpush.bf16.msrb.mxu3 %v1799_v46 }
 0x182   : > { %v741_v34 = vadd.f32 %v2524_v29, %v740_v10 }
 0x184   : > { %v767_v40 = vmax.f32 %v741_v34, 0.0  ;;  %v2545_v34 = vld [vmem:[%s2811_s6] ss:$0 sm:$0xff] }
 0x185   : > { %v725_v48 = vpop.f32.mrf.mxu1 }
 0x186   : > { %v726_v49 = vadd.f32 %v2524_v29, %v725_v48  ;;  %v778_v43 = vpack.c.bf16 %v767_v40, %v766_v35  ;;  %v1798_v48 = vld [vmem:[#allocation8 + $0x60] sm:$0xff] }
 0x187   : > { %1012 = vmatpush.bf16.msrb.mxu3 %v1798_v48 }
 0x188   : > { %v761_v54 = vmax.f32 %v726_v49, 0.0 }
 0x189   : > { %v743_v27 = vpop.f32.mrf.mxu3 }
 0x18a   : > { %v775_v56 = vpack.c.bf16 %v761_v54, %v760_v50  ;;  %v744_v50 = vadd.f32 %v2524_v29, %v743_v27 }
 0x18c   : > { %863 = vmatmul.bf16.gmra.mxu2 %v775_v56  ;;  %v768_v56 = vmax.f32 %v744_v50, 0.0 }
 0x18d   : > { %v728_v57 = vpop.f32.mrf.mxu1 }
 0x18e   : > { %v729_v59 = vadd.f32 %v2524_v29, %v728_v57 }
 0x190   : > { %v762_v0 = vmax.f32 %v729_v59, 0.0 }
 0x191   : > { %v745_v41 = vpop.f32.mrf.mxu3 }
 0x192   : > { %v746_v54 = vadd.f32 %v2524_v29, %v745_v41 }
 0x194   : > { %v769_v57 = vmax.f32 %v746_v54, 0.0 }
 0x195   : > { %v730_v60 = vpop.f32.mrf.mxu1 }
 0x196   : > { %v731_v63 = vadd.f32 %v2524_v29, %v730_v60  ;;  %v779_v59 = vpack.c.bf16 %v769_v57, %v768_v56 }
 0x198   : > { %v763_v2 = vmax.f32 %v731_v63, 0.0  ;;  %v1797_v63 = vld [vmem:[#allocation8 + $0x58] sm:$0xff] }
 0x199   : > { %v748_v49 = vpop.f32.mrf.mxu3  ;;  %1013 = vmatpush.bf16.msrb.mxu3 %v1797_v63 }
 0x19a   : > { %v776_v4 = vpack.c.bf16 %v763_v2, %v762_v0  ;;  %v1796_v0 = vld [vmem:[#allocation8 + $0x50] sm:$0xff]  ;;  %v749_v2 = vadd.f32 %v2524_v29, %v748_v49 }
 0x19c   : > { %868 = vmatmul.bf16.gmra.mxu2 %v776_v4 }
 0x19d   : > { %v733_v7 = vpop.f32.mrf.mxu1  ;;  %1014 = vmatpush.bf16.msrb.mxu3 %v1796_v0 }
 0x19e   : > { %v734_v11 = vadd.f32 %v2524_v29, %v733_v7  ;;  %v770_v7 = vmax.f32 %v749_v2, 0.0 }
 0x1a0   : > { %v764_v17 = vmax.f32 %v734_v11, 0.0 }
 0x1a1   : > { %v750_v60 = vpop.f32.mrf.mxu3 }
 0x1a2   : > { %v751_v3 = vadd.f32 %v2524_v29, %v750_v60 }
 0x1a4   : > { %v771_v10 = vmax.f32 %v751_v3, 0.0 }
 0x1a5   : > { %v735_v12 = vpop.f32.mrf.mxu1 }
 0x1a6   : > { %v736_v14 = vadd.f32 %v2524_v29, %v735_v12  ;;  %v780_v11 = vpack.c.bf16 %v771_v10, %v770_v7 }
 0x1a8   : > { %v765_v19 = vmax.f32 %v736_v14, 0.0 }
 0x1a9   : > { %v753_v4 = vpop.f32.mrf.mxu3 }
 0x1aa   : > { %v777_v23 = vpack.c.bf16 %v765_v19, %v764_v17  ;;  %v754_v14 = vadd.f32 %v2524_v29, %v753_v4  ;;  %v1795_v19 = vld [vmem:[#allocation8 + $0x48] sm:$0xff] }
 0x1ab   : > { %1015 = vmatpush.bf16.msrb.mxu3 %v1795_v19 }
 0x1ac   : > { %873 = vmatmul.bf16.gmra.mxu2 %v777_v23  ;;  %v772_v23 = vmax.f32 %v754_v14, 0.0 }
 0x1af   : > { %1016 = vmatpush.bf16.msrb.mxu3 %v1794_v32 }
 0x1b1   : > { %v755_v12 = vpop.f32.mrf.mxu3 }
 0x1b2   : > { %v756_v17 = vadd.f32 %v2524_v29, %v755_v12 }
 0x1b4   : > { %v773_v24 = vmax.f32 %v756_v17, 0.0 }
 0x1b6   : > { %v781_v27 = vpack.c.bf16 %v773_v24, %v772_v23 }
 0x1bc   : > { %878 = vmatmul.bf16.gmra.mxu2 %v778_v43 }
 0x1cc   : > { %883 = vmatmul.bf16.gmra.mxu2 %v779_v59 }
 0x1dc   : > { %888 = vmatmul.bf16.gmra.mxu2 %v780_v11 }
 0x1ec   : > { %893 = vmatmul.bf16.gmra.mxu2 %v781_v27  ;;  %v1808_v27 = vld [vmem:[#allocation10 + $0x70] sm:$0xff] }
 0x1ff   : > { %v859_v25 = vpop.f32.mrf.mxu2 }
 0x200   : > { %v860_v35 = vadd.f32 %v2545_v34, %v859_v25  ;;  %v1807_v25 = vld [vmem:[#allocation10 + $0x68] sm:$0xff] }
 0x202   : > { %v2550_v29 = vadd.f32 %v860_v35, %v617_v30 }
 0x204   : > { %v915_v46 = vmax.f32 %v2550_v29, 0.0 }
 0x207   : > { %v861_v40 = vpop.f32.mrf.mxu2 }
 0x208   : > { %v862_v41 = vadd.f32 %v2545_v34, %v861_v40 }
 0x20a   : > { %v2555_v43 = vadd.f32 %v862_v41, %v618_v31 }
 0x20c   : > { %v916_v48 = vmax.f32 %v2555_v43, 0.0 }
 0x20e   : > { %v931_v49 = vpack.c.bf16 %v916_v48, %v915_v46 }
 0x20f   : > { %v864_v50 = vpop.f32.mrf.mxu2 }
 0x210   : > { %1017 = vmatmul.bf16.vlgmr.msrb.gmra.mxu3 %v931_v49  ;;  %v865_v26 = vadd.f32 %v2545_v34, %v864_v50  ;;  %v1806_v50 = vld [vmem:[#allocation10 + $0x60] sm:$0xff] }
 0x212   : > { %v2566_v54 = vadd.f32 %v865_v26, %v619_v44 }
 0x214   : > { %v917_v56 = vmax.f32 %v2566_v54, 0.0 }
 0x217   : > { %v866_v30 = vpop.f32.mrf.mxu2 }
 0x218   : > { %v867_v28 = vadd.f32 %v2545_v34, %v866_v30  ;;  %v1804_v30 = vld [vmem:[#allocation10 + $0x50] sm:$0xff] }
 0x21a   : > { %v2571_v31 = vadd.f32 %v867_v28, %v620_v45 }
 0x21c   : > { %v918_v57 = vmax.f32 %v2571_v31, 0.0 }
 0x21e   : > { %v932_v59 = vpack.c.bf16 %v918_v57, %v917_v56 }
 0x21f   : > { %v869_v60 = vpop.f32.mrf.mxu2 }
 0x220   : > { %1022 = vmatmul.bf16.gmra.mxu3 %v932_v59  ;;  %v870_v39 = vadd.f32 %v2545_v34, %v869_v60 }
 0x222   : > { %v2582_v63 = vadd.f32 %v870_v39, %v621_v61 }
 0x224   : > { %v919_v0 = vmax.f32 %v2582_v63, 0.0 }
 0x227   : > { %v871_v44 = vpop.f32.mrf.mxu2 }
 0x228   : > { %v872_v42 = vadd.f32 %v2545_v34, %v871_v44 }
 0x22a   : > { %v2587_v45 = vadd.f32 %v872_v42, %v622_v62 }
 0x22c   : > { %v920_v2 = vmax.f32 %v2587_v45, 0.0 }
 0x22e   : > { %v933_v3 = vpack.c.bf16 %v920_v2, %v919_v0 }
 0x22f   : > { %v874_v4 = vpop.f32.mrf.mxu2 }
 0x230   : > { %1027 = vmatmul.bf16.gmra.mxu3 %v933_v3  ;;  %v875_v55 = vadd.f32 %v2545_v34, %v874_v4 }
 0x232   : > { %v2598_v7 = vadd.f32 %v875_v55, %v623_v15  ;;  %v1809_v15 = vld [vmem:[#allocation10 + $0x78] sm:$0xff] }
 0x233   : > { %1152 = vmatpush.bf16.msrb.mxu0 %v1809_v15 }
 0x234   : > { %v921_v10 = vmax.f32 %v2598_v7, 0.0 }
 0x237   : > { %v876_v61 = vpop.f32.mrf.mxu2  ;;  %1153 = vmatpush.bf16.msrb.mxu0 %v1808_v27 }
 0x238   : > { %v877_v58 = vadd.f32 %v2545_v34, %v876_v61 }
 0x23a   : > { %v2603_v62 = vadd.f32 %v877_v58, %v624_v16 }
 0x23b   : > { %1154 = vmatpush.bf16.msrb.mxu0 %v1807_v25 }
 0x23c   : > { %v922_v11 = vmax.f32 %v2603_v62, 0.0 }
 0x23e   : > { %v934_v12 = vpack.c.bf16 %v922_v11, %v921_v10 }
 0x23f   : > { %v879_v14 = vpop.f32.mrf.mxu2  ;;  %1155 = vmatpush.bf16.msrb.mxu0 %v1806_v50 }
 0x240   : > { %1032 = vmatmul.bf16.gmra.mxu3 %v934_v12  ;;  %v880_v9 = vadd.f32 %v2545_v34, %v879_v14 }
 0x242   : > { %v2614_v13 = vadd.f32 %v880_v9, %v625_v36 }
 0x244   : > { %v923_v23 = vmax.f32 %v2614_v13, 0.0 }
 0x247   : > { %v881_v17 = vpop.f32.mrf.mxu2 }
 0x248   : > { %v882_v16 = vadd.f32 %v2545_v34, %v881_v17 }
 0x24a   : > { %v2619_v19 = vadd.f32 %v882_v16, %v626_v38 }
 0x24c   : > { %v924_v24 = vmax.f32 %v2619_v19, 0.0 }
 0x24e   : > { %v935_v32 = vpack.c.bf16 %v924_v24, %v923_v23 }
 0x24f   : > { %v884_v33 = vpop.f32.mrf.mxu2 }
 0x250   : > { %1037 = vmatmul.bf16.gmra.mxu3 %v935_v32  ;;  %v885_v36 = vadd.f32 %v2545_v34, %v884_v33 }
 0x252   : > { %v2630_v38 = vadd.f32 %v885_v36, %v627_v51  ;;  %v1805_v51 = vld [vmem:[#allocation10 + $0x58] sm:$0xff] }
 0x253   : > { %1156 = vmatpush.bf16.msrb.mxu0 %v1805_v51 }
 0x254   : > { %v925_v41 = vmax.f32 %v2630_v38, 0.0 }
 0x257   : > { %v886_v37 = vpop.f32.mrf.mxu2  ;;  %1157 = vmatpush.bf16.msrb.mxu0 %v1804_v30 }
 0x258   : > { %v887_v35 = vadd.f32 %v2545_v34, %v886_v37 }
 0x25a   : > { %v2635_v40 = vadd.f32 %v887_v35, %v628_v53  ;;  %v1803_v53 = vld [vmem:[#allocation10 + $0x48] sm:$0xff] }
 0x25b   : > { %1158 = vmatpush.bf16.msrb.mxu0 %v1803_v53 }
 0x25c   : > { %v926_v49 = vmax.f32 %v2635_v40, 0.0 }
 0x25e   : > { %v936_v26 = vpack.c.bf16 %v926_v49, %v925_v41 }
 0x25f   : > { %v889_v47 = vpop.f32.mrf.mxu2 }
 0x260   : > { %1042 = vmatmul.bf16.gmra.mxu3 %v936_v26  ;;  %v890_v52 = vadd.f32 %v2545_v34, %v889_v47 }
 0x262   : > { %v2646_v59 = vadd.f32 %v890_v52, %v629_v5  ;;  %v1802_v5 = vld [vmem:[#allocation10 + $0x40] sm:$0xff] }
 0x263   : > { %1159 = vmatpush.bf16.msrb.mxu0 %v1802_v5  ;;  %v1817_v5 = vld [vmem:[#allocation11 + $0x38] sm:$0xff] }
 0x264   : > { %v927_v44 = vmax.f32 %v2646_v59, 0.0  ;;  %1309 = vmatpush.bf16.msrb.mxu1 %v1817_v5 }
 0x267   : > { %v891_v28 = vpop.f32.mrf.mxu2 }
 0x268   : > { %v892_v60 = vadd.f32 %v2545_v34, %v891_v28 }
 0x26a   : > { %v2651_v39 = vadd.f32 %v892_v60, %v630_v8 }
 0x26c   : > { %v928_v42 = vmax.f32 %v2651_v39, 0.0 }
 0x26e   : > { %v937_v3 = vpack.c.bf16 %v928_v42, %v927_v44 }
 0x26f   : > { %v894_v4 = vpop.f32.mrf.mxu2 }
 0x270   : > { %1047 = vmatmul.bf16.gmra.mxu3 %v937_v3  ;;  %v895_v1 = vadd.f32 %v2545_v34, %v894_v4 }
 0x272   : > { %v2662_v6 = vadd.f32 %v895_v1, %v631_v20  ;;  %v2678_v20 = vld [vmem:[%s2809_s4 + $0x1] ss:$0 sm:$0xff] }
 0x274   : > { %v929_v58 = vmax.f32 %v2662_v6, 0.0 }
 0x277   : > { %v896_v55 = vpop.f32.mrf.mxu2 }
 0x278   : > { %v897_v8 = vadd.f32 %v2545_v34, %v896_v55 }
 0x27a   : > { %v2667_v61 = vadd.f32 %v897_v8, %v632_v22 }
 0x27c   : > { %v930_v12 = vmax.f32 %v2667_v61, 0.0 }
 0x27e   : > { %v938_v14 = vpack.c.bf16 %v930_v12, %v929_v58 }
 0x280   : > { %1052 = vmatmul.bf16.gmra.mxu3 %v938_v14  ;;  %v1816_v14 = vld [vmem:[#allocation11 + $0x30] sm:$0xff] }
 0x281   : > { %1310 = vmatpush.bf16.msrb.mxu1 %v1816_v14 }
 0x293   : > { %v1018_v18 = vpop.f32.mrf.mxu3 }
 0x294   : > { %v1019_v21 = vadd.f32 %v2678_v20, %v1018_v18 }
 0x296   : > { %v1058_v9 = vmax.f32 %v1019_v21, 0.0 }
 0x29b   : > { %v1020_v22 = vpop.f32.mrf.mxu3 }
 0x29c   : > { %v1021_v34 = vadd.f32 %v2678_v20, %v1020_v22 }
 0x29e   : > { %v1059_v15 = vmax.f32 %v1021_v34, 0.0 }
 0x2a0   : > { %v1074_v17 = vpack.c.bf16 %v1059_v15, %v1058_v9  ;;  %v1815_v15 = vld [vmem:[#allocation11 + $0x28] sm:$0xff] }
 0x2a1   : > { %1311 = vmatpush.bf16.msrb.mxu1 %v1815_v15 }
 0x2a2   : > { %1160 = vmatmul.bf16.vlgmr.msrb.gmra.mxu0 %v1074_v17 }
 0x2a3   : > { %v1023_v16 = vpop.f32.mrf.mxu3 }
 0x2a4   : > { %v1024_v27 = vadd.f32 %v2678_v20, %v1023_v16 }
 0x2a6   : > { %v1060_v36 = vmax.f32 %v1024_v27, 0.0  ;;  %v1814_v27 = vld [vmem:[#allocation11 + $0x20] sm:$0xff] }
 0x2a7   : > { %1312 = vmatpush.bf16.msrb.mxu1 %v1814_v27 }
 0x2ab   : > { %v1025_v32 = vpop.f32.mrf.mxu3 }
 0x2ac   : > { %v1026_v33 = vadd.f32 %v2678_v20, %v1025_v32 }
 0x2ae   : > { %v1061_v25 = vmax.f32 %v1026_v33, 0.0 }
 0x2b0   : > { %v1075_v37 = vpack.c.bf16 %v1061_v25, %v1060_v36 }
 0x2b2   : > { %1165 = vmatmul.bf16.gmra.mxu0 %v1075_v37 }
 0x2b3   : > { %v1028_v35 = vpop.f32.mrf.mxu3 }
 0x2b4   : > { %v1029_v50 = vadd.f32 %v2678_v20, %v1028_v35  ;;  %v1813_v35 = vld [vmem:[#allocation11 + $0x18] sm:$0xff] }
 0x2b5   : > { %1313 = vmatpush.bf16.msrb.mxu1 %v1813_v35 }
 0x2b6   : > { %v1062_v51 = vmax.f32 %v1029_v50, 0.0 }
 0x2bb   : > { %v1030_v26 = vpop.f32.mrf.mxu3 }
 0x2bc   : > { %v1031_v47 = vadd.f32 %v2678_v20, %v1030_v26  ;;  %v1812_v26 = vld [vmem:[#allocation11 + $0x10] sm:$0xff] }
 0x2bd   : > { %1314 = vmatpush.bf16.msrb.mxu1 %v1812_v26 }
 0x2be   : > { %v1063_v30 = vmax.f32 %v1031_v47, 0.0 }
 0x2c0   : > { %v1076_v52 = vpack.c.bf16 %v1063_v30, %v1062_v51 }
 0x2c2   : > { %1170 = vmatmul.bf16.gmra.mxu0 %v1076_v52 }
 0x2c3   : > { %v1033_v53 = vpop.f32.mrf.mxu3 }
 0x2c4   : > { %v1034_v28 = vadd.f32 %v2678_v20, %v1033_v53 }
 0x2c6   : > { %v1064_v4 = vmax.f32 %v1034_v28, 0.0 }
 0x2cb   : > { %v1035_v60 = vpop.f32.mrf.mxu3 }
 0x2cc   : > { %v1036_v3 = vadd.f32 %v2678_v20, %v1035_v60 }
 0x2ce   : > { %v1065_v1 = vmax.f32 %v1036_v3, 0.0 }
 0x2d0   : > { %v1077_v55 = vpack.c.bf16 %v1065_v1, %v1064_v4  ;;  %v1811_v4 = vld [vmem:[#allocation11 + $0x8] sm:$0xff] }
 0x2d1   : > { %1315 = vmatpush.bf16.msrb.mxu1 %v1811_v4 }
 0x2d2   : > { %1175 = vmatmul.bf16.gmra.mxu0 %v1077_v55  ;;  %v1810_v55 = vld [vmem:[#allocation11] sm:$0xff] }
 0x2d3   : > { %v1038_v8 = vpop.f32.mrf.mxu3 }
 0x2d4   : > { %v1039_v18 = vadd.f32 %v2678_v20, %v1038_v8 }
 0x2d5   : > { %1316 = vmatpush.bf16.msrb.mxu1 %v1810_v55 }
 0x2d6   : > { %v1066_v34 = vmax.f32 %v1039_v18, 0.0 }
 0x2db   : > { %v1040_v21 = vpop.f32.mrf.mxu3 }
 0x2dc   : > { %v1041_v22 = vadd.f32 %v2678_v20, %v1040_v21 }
 0x2de   : > { %v1067_v9 = vmax.f32 %v1041_v22, 0.0 }
 0x2e0   : > { %v1078_v17 = vpack.c.bf16 %v1067_v9, %v1066_v34  ;;  %v2699_v34 = vld [vmem:[%s2811_s6 + $0x1] ss:$0 sm:$0xff] }
 0x2e2   : > { %1180 = vmatmul.bf16.gmra.mxu0 %v1078_v17 }
 0x2e3   : > { %v1043_v16 = vpop.f32.mrf.mxu3 }
 0x2e4   : > { %v1044_v32 = vadd.f32 %v2678_v20, %v1043_v16 }
 0x2e6   : > { %v1068_v25 = vmax.f32 %v1044_v32, 0.0 }
 0x2eb   : > { %v1045_v33 = vpop.f32.mrf.mxu3 }
 0x2ec   : > { %v1046_v36 = vadd.f32 %v2678_v20, %v1045_v33 }
 0x2ee   : > { %v1069_v37 = vmax.f32 %v1046_v36, 0.0 }
 0x2f0   : > { %v1079_v50 = vpack.c.bf16 %v1069_v37, %v1068_v25 }
 0x2f2   : > { %1185 = vmatmul.bf16.gmra.mxu0 %v1079_v50 }
 0x2f3   : > { %v1048_v47 = vpop.f32.mrf.mxu3 }
 0x2f4   : > { %v1049_v51 = vadd.f32 %v2678_v20, %v1048_v47 }
 0x2f6   : > { %v1070_v53 = vmax.f32 %v1049_v51, 0.0 }
 0x2fb   : > { %v1050_v30 = vpop.f32.mrf.mxu3 }
 0x2fc   : > { %v1051_v52 = vadd.f32 %v2678_v20, %v1050_v30 }
 0x2fe   : > { %v1071_v28 = vmax.f32 %v1051_v52, 0.0 }
 0x300   : > { %v1080_v60 = vpack.c.bf16 %v1071_v28, %v1070_v53 }
 0x302   : > { %1190 = vmatmul.bf16.gmra.mxu0 %v1080_v60 }
 0x303   : > { %v1053_v3 = vpop.f32.mrf.mxu3 }
 0x304   : > { %v1054_v1 = vadd.f32 %v2678_v20, %v1053_v3 }
 0x306   : > { %v1072_v14 = vmax.f32 %v1054_v1, 0.0 }
 0x30b   : > { %v1055_v5 = vpop.f32.mrf.mxu3 }
 0x30c   : > { %v1056_v8 = vadd.f32 %v2678_v20, %v1055_v5 }
 0x30e   : > { %v1073_v18 = vmax.f32 %v1056_v8, 0.0 }
 0x310   : > { %v1081_v21 = vpack.c.bf16 %v1073_v18, %v1072_v14 }
 0x312   : > { %1195 = vmatmul.bf16.gmra.mxu0 %v1081_v21 }
 0x31f   : > { %v1161_v22 = vpop.f32.mrf.mxu0 }
 0x320   : > { %v1162_v9 = vadd.f32 %v2699_v34, %v1161_v22 }
 0x322   : > { %v1201_v17 = vadd.f32 %v1162_v9, %v915_v46 }
 0x324   : > { %v1217_v27 = vmax.f32 %v1201_v17, 0.0 }
 0x327   : > { %v1163_v15 = vpop.f32.mrf.mxu0 }
 0x328   : > { %v1164_v16 = vadd.f32 %v2699_v34, %v1163_v15 }
 0x32a   : > { %v1202_v20 = vadd.f32 %v1164_v16, %v916_v48 }
 0x32c   : > { %v1218_v32 = vmax.f32 %v1202_v20, 0.0 }
 0x32e   : > { %v1233_v33 = vpack.c.bf16 %v1218_v32, %v1217_v27 }
 0x32f   : > { %v1166_v36 = vpop.f32.mrf.mxu0 }
 0x330   : > { %1317 = vmatmul.bf16.vlgmr.msrb.gmra.mxu1 %v1233_v33  ;;  %v1167_v25 = vadd.f32 %v2699_v34, %v1166_v36 }
 0x332   : > { %v1203_v35 = vadd.f32 %v1167_v25, %v917_v56 }
 0x334   : > { %v1219_v46 = vmax.f32 %v1203_v35, 0.0 }
 0x337   : > { %v1168_v37 = vpop.f32.mrf.mxu0 }
 0x338   : > { %v1169_v50 = vadd.f32 %v2699_v34, %v1168_v37 }
 0x33a   : > { %v1204_v29 = vadd.f32 %v1169_v50, %v918_v57 }
 0x33c   : > { %v1220_v26 = vmax.f32 %v1204_v29, 0.0 }
 0x33e   : > { %v1234_v43 = vpack.c.bf16 %v1220_v26, %v1219_v46 }
 0x33f   : > { %v1171_v48 = vpop.f32.mrf.mxu0 }
 0x340   : > { %1322 = vmatmul.bf16.gmra.mxu1 %v1234_v43  ;;  %v1172_v47 = vadd.f32 %v2699_v34, %v1171_v48 }
 0x342   : > { %v1205_v30 = vadd.f32 %v1172_v47, %v919_v0 }
 0x344   : > { %v1221_v56 = vmax.f32 %v1205_v30, 0.0 }
 0x347   : > { %v1173_v51 = vpop.f32.mrf.mxu0 }
 0x348   : > { %v1174_v52 = vadd.f32 %v2699_v34, %v1173_v51 }
 0x34a   : > { %v1206_v54 = vadd.f32 %v1174_v52, %v920_v2 }
 0x34c   : > { %v1222_v53 = vmax.f32 %v1206_v54, 0.0 }
 0x34e   : > { %v1235_v31 = vpack.c.bf16 %v1222_v53, %v1221_v56 }
 0x34f   : > { %v1176_v57 = vpop.f32.mrf.mxu0 }
 0x350   : > { %1327 = vmatmul.bf16.gmra.mxu1 %v1235_v31  ;;  %v1177_v28 = vadd.f32 %v2699_v34, %v1176_v57 }
 0x352   : > { %v1207_v3 = vadd.f32 %v1177_v28, %v921_v10 }
 0x354   : > { %v1223_v0 = vmax.f32 %v1207_v3, 0.0 }
 0x357   : > { %v1178_v60 = vpop.f32.mrf.mxu0 }
 0x358   : > { %v1179_v4 = vadd.f32 %v2699_v34, %v1178_v60 }
 0x35a   : > { %v1208_v63 = vadd.f32 %v1179_v4, %v922_v11 }
 0x35c   : > { %v1224_v1 = vmax.f32 %v1208_v63, 0.0 }
 0x35e   : > { %v1236_v45 = vpack.c.bf16 %v1224_v1, %v1223_v0 }
 0x35f   : > { %v1181_v2 = vpop.f32.mrf.mxu0 }
 0x360   : > { %1332 = vmatmul.bf16.gmra.mxu1 %v1236_v45  ;;  %v1182_v5 = vadd.f32 %v2699_v34, %v1181_v2 }
 0x362   : > { %v1209_v8 = vadd.f32 %v1182_v5, %v923_v23 }
 0x364   : > { %v1225_v10 = vmax.f32 %v1209_v8, 0.0 }
 0x367   : > { %v1183_v55 = vpop.f32.mrf.mxu0 }
 0x368   : > { %v1184_v14 = vadd.f32 %v2699_v34, %v1183_v55 }
 0x36a   : > { %v1210_v7 = vadd.f32 %v1184_v14, %v924_v24 }
 0x36c   : > { %v1226_v18 = vmax.f32 %v1210_v7, 0.0 }
 0x36e   : > { %v1237_v62 = vpack.c.bf16 %v1226_v18, %v1225_v10 }
 0x36f   : > { %v1186_v11 = vpop.f32.mrf.mxu0 }
 0x370   : > { %1337 = vmatmul.bf16.gmra.mxu1 %v1237_v62  ;;  %v1187_v21 = vadd.f32 %v2699_v34, %v1186_v11 }
 0x372   : > { %v1211_v9 = vadd.f32 %v1187_v21, %v925_v41 }
 0x374   : > { %v1227_v23 = vmax.f32 %v1211_v9, 0.0 }
 0x377   : > { %v1188_v22 = vpop.f32.mrf.mxu0 }
 0x378   : > { %v1189_v15 = vadd.f32 %v2699_v34, %v1188_v22 }
 0x37a   : > { %v1212_v13 = vadd.f32 %v1189_v15, %v926_v49 }
 0x37c   : > { %v1228_v17 = vmax.f32 %v1212_v13, 0.0 }
 0x37e   : > { %v1238_v19 = vpack.c.bf16 %v1228_v17, %v1227_v23 }
 0x37f   : > { %v1191_v24 = vpop.f32.mrf.mxu0 }
 0x380   : > { %1342 = vmatmul.bf16.gmra.mxu1 %v1238_v19  ;;  %v1192_v16 = vadd.f32 %v2699_v34, %v1191_v24 }
 0x382   : > { %v1213_v27 = vadd.f32 %v1192_v16, %v927_v44 }
 0x384   : > { %v1229_v41 = vmax.f32 %v1213_v27, 0.0 }
 0x387   : > { %v1193_v20 = vpop.f32.mrf.mxu0 }
 0x388   : > { %v1194_v32 = vadd.f32 %v2699_v34, %v1193_v20 }
 0x38a   : > { %v1214_v38 = vadd.f32 %v1194_v32, %v928_v42  ;;  %v1941_v42 = vld [vmem:[%s2813_s8] ss:$0 sm:$0xff] }
 0x38c   : > { %v1230_v40 = vmax.f32 %v1214_v38, 0.0 }
 0x38e   : > { %v1239_v49 = vpack.c.bf16 %v1230_v40, %v1229_v41 }
 0x38f   : > { %v1196_v33 = vpop.f32.mrf.mxu0 }
 0x390   : > { %1347 = vmatmul.bf16.gmra.mxu1 %v1239_v49  ;;  %v1197_v36 = vadd.f32 %v2699_v34, %v1196_v33 }
 0x392   : > { %v1215_v37 = vadd.f32 %v1197_v36, %v929_v58 }
 0x394   : > { %v1231_v35 = vmax.f32 %v1215_v37, 0.0 }
 0x397   : > { %v1198_v25 = vpop.f32.mrf.mxu0 }
 0x398   : > { %v1199_v59 = vadd.f32 %v2699_v34, %v1198_v25 }
 0x39a   : > { %v1216_v44 = vadd.f32 %v1199_v59, %v930_v12 }
 0x39c   : > { %v1232_v39 = vmax.f32 %v1216_v44, 0.0 }
 0x39e   : > { %v1240_v50 = vpack.c.bf16 %v1232_v39, %v1231_v35 }
 0x3a0   : > { %1352 = vmatmul.bf16.gmra.mxu1 %v1240_v50 }
 0x3ad   : > { %v1318_v29 = vpop.f32.mrf.mxu1 }
 0x3ae   : > { %v1319_v46 = vadd.f32 %v1941_v42, %v1318_v29 }
 0x3b0   : > { %1358 = vst [vmem:[%s2753_s2] sm:$0xff] %v1319_v46 }
 0x3b5   : > { %v1320_v6 = vpop.f32.mrf.mxu1 }
 0x3b6   : > { %v1321_v61 = vadd.f32 %v1941_v42, %v1320_v6 }
 0x3b8   : > { %1359 = vst [vmem:[%s2753_s2 + $0x8] sm:$0xff] %v1321_v61 }
 0x3bd   : > { %v1323_v58 = vpop.f32.mrf.mxu1 }
 0x3be   : > { %v1324_v12 = vadd.f32 %v1941_v42, %v1323_v58 }
 0x3c0   : > { %1360 = vst [vmem:[%s2753_s2 + $0x10] sm:$0xff] %v1324_v12 }
 0x3c5   : > { %v1325_v34 = vpop.f32.mrf.mxu1 }
 0x3c6   : > { %v1326_v26 = vadd.f32 %v1941_v42, %v1325_v34 }
 0x3c8   : > { %1361 = vst [vmem:[%s2753_s2 + $0x18] sm:$0xff] %v1326_v26 }
 0x3cd   : > { %v1328_v43 = vpop.f32.mrf.mxu1 }
 0x3ce   : > { %v1329_v48 = vadd.f32 %v1941_v42, %v1328_v43 }
 0x3d0   : > { %1362 = vst [vmem:[%s2753_s2 + $0x20] sm:$0xff] %v1329_v48 }
 0x3d5   : > { %v1330_v47 = vpop.f32.mrf.mxu1 }
 0x3d6   : > { %v1331_v51 = vadd.f32 %v1941_v42, %v1330_v47 }
 0x3d8   : > { %1363 = vst [vmem:[%s2753_s2 + $0x28] sm:$0xff] %v1331_v51 }
 0x3dd   : > { %v1333_v30 = vpop.f32.mrf.mxu1 }
 0x3de   : > { %v1334_v52 = vadd.f32 %v1941_v42, %v1333_v30 }
 0x3e0   : > { %1364 = vst [vmem:[%s2753_s2 + $0x30] sm:$0xff] %v1334_v52 }
 0x3e5   : > { %v1335_v54 = vpop.f32.mrf.mxu1 }
 0x3e6   : > { %v1336_v56 = vadd.f32 %v1941_v42, %v1335_v54 }
 0x3e8   : > { %1365 = vst [vmem:[%s2753_s2 + $0x38] sm:$0xff] %v1336_v56 }
 0x3ed   : > { %v1338_v53 = vpop.f32.mrf.mxu1 }
 0x3ee   : > { %v1339_v31 = vadd.f32 %v1941_v42, %v1338_v53 }
 0x3f0   : > { %1366 = vst [vmem:[%s2753_s2 + $0x40] sm:$0xff] %v1339_v31 }
 0x3f5   : > { %v1340_v57 = vpop.f32.mrf.mxu1 }
 0x3f6   : > { %v1341_v28 = vadd.f32 %v1941_v42, %v1340_v57 }
 0x3f8   : > { %1367 = vst [vmem:[%s2753_s2 + $0x48] sm:$0xff] %v1341_v28 }
 0x3fd   : > { %v1343_v60 = vpop.f32.mrf.mxu1 }
 0x3fe   : > { %v1344_v3 = vadd.f32 %v1941_v42, %v1343_v60 }
 0x400   : > { %1368 = vst [vmem:[%s2753_s2 + $0x50] sm:$0xff] %v1344_v3 }
 0x405   : > { %v1345_v4 = vpop.f32.mrf.mxu1 }
 0x406   : > { %v1346_v63 = vadd.f32 %v1941_v42, %v1345_v4 }
 0x408   : > { %1369 = vst [vmem:[%s2753_s2 + $0x58] sm:$0xff] %v1346_v63 }
 0x40d   : > { %v1348_v0 = vpop.f32.mrf.mxu1 }
 0x40e   : > { %v1349_v1 = vadd.f32 %v1941_v42, %v1348_v0 }
 0x410   : > { %1370 = vst [vmem:[%s2753_s2 + $0x60] sm:$0xff] %v1349_v1 }
 0x415   : > { %v1350_v45 = vpop.f32.mrf.mxu1 }
 0x416   : > { %v1351_v2 = vadd.f32 %v1941_v42, %v1350_v45 }
 0x418   : > { %1371 = vst [vmem:[%s2753_s2 + $0x68] sm:$0xff] %v1351_v2 }
 0x41d   : > { %v1353_v5 = vpop.f32.mrf.mxu1 }
 0x41e   : > { %v1354_v55 = vadd.f32 %v1941_v42, %v1353_v5 }
 0x420   : > { %1372 = vst [vmem:[%s2753_s2 + $0x70] sm:$0xff] %v1354_v55 }
 0x425   : > { %v1355_v8 = vpop.f32.mrf.mxu1 }
 0x426   : > { %v1356_v14 = vadd.f32 %v1941_v42, %v1355_v8 }
 0x428   : > { %1373 = vst [vmem:[%s2753_s2 + $0x78] sm:$0xff] %v1356_v14 }
 0x429   : > { %2149 = shalt.err (!%p2146_p9)
}
 0x42a   : > { %s2209_s27 = smov 128   ;;  %s2210_s2 = smov 8  }
 0x42b   : > { %1857 = dma.vmem_to_hbm [thread:$0]  (%p2359_p13), %s1388_s13, 2048, %s1390_s23, %s1375_s24, %s2209_s27, %s2209_s27, %s2210_s2  }
 0x42c PF: > { %s1404_s3 = sand.u32 1, %s2188_s30   ;;  %p2831_p10 = scmp.ge.s32.totalorder %s2200_s12, 2 }
 0x42d   : > { %s1405_s26 = scalar_lea.sflag [#allocation4], %s1404_s3 }
 0x42e   : > { %p1880_p11 = pnand %p2831_p10, %p2364_p4 }
 0x430   : > { %p1881_p0 = pneg %p1880_p11 }
 0x432   : > { %2183 = dma.done.wait (%p1881_p0), %s1405_s26, 2048  }
 0x433   : > { %2185 = vsyncadd (%p1881_p0), %s1405_s26, 4294965248  ;;  %p25_p2 = scmp.ge.s32.totalorder %s2339_s18, 4   ;;  %s2832_s30 = smov %s2192_s10 }
 0x434   : > { %s2833_s10 = smov %s2196_s11  ;;  %s2834_s11 = smov %s2351_s20 }
 0x435   : > { %s2835_s12 = smov %s2339_s18  ;;  %27 = sbr.rel (!%p25_p2) target bundleno = 12 (0xc), region = 125 }
 0x43a   :  { %1411 = vsyncpa [#allocation3], 1 }
 0x43b   :  { %1413 = vsyncpa [#allocation3 + $0x1], 1 }
 0x43c   :  { %1414 = vsyncpa [#allocation6], 1 }
 0x43d   :  { %1415 = vsyncpa [#allocation9], 1 }
 0x43e   :  { %1416 = vsyncpa [#allocation12], 1 }
 0x43f   :  { %1417 = vsyncpa [#allocation4], 1 }
 0x440   :  { %1419 = vsyncpa [#allocation4 + $0x1], 1 }

// kernel: tpu_custom_call.1
= control target key start
LH: loop header
LB: loop body
LE: loop exit
PB: predicated region body
PF: predicated region fallthrough
CT: control target
= control target key end

     0   :  { %s2805_s0 = inlined_call_operand.hbm [shape: bf16[256,128], index: 0, kind: input, shape index: {}]   ;;  %s2806_s1 = inlined_call_operand.hbm [shape: bf16[128,128], index: 1, kind: input, shape index: {}]   ;;  %s2807_s2 = inlined_call_operand.hbm [shape: f32[1,128], index: 2, kind: input, shape index: {}]   ;;  %s2808_s3 = inlined_call_operand.hbm [shape: bf16[2,128,128], index: 3, kind: input, shape index: {}]   ;;  %s2809_s4 = inlined_call_operand.vmem [shape: f32[2,1,128], index: 4, kind: input, shape index: {}]   ;;  %s2810_s5 = inlined_call_operand.hbm [shape: bf16[2,128,128], index: 5, kind: input, shape index: {}]   ;;  %s2811_s6 = inlined_call_operand.vmem [shape: f32[2,1,128], index: 6, kind: input, shape index: {}]   ;;  %s2812_s7 = inlined_call_operand.hbm [shape: bf16[128,128], index: 7, kind: input, shape index: {}]   ;;  %s2813_s8 = inlined_call_operand.vmem [shape: f32[1,128], index: 8, kind: input, shape index: {}]   ;;  %s2814_s9 = inlined_call_operand.hbm [shape: f32[256,128], index: 9, kind: output, shape index: {}]  }
   0x1   :  { %2817 = sst [smem:[#allocation19_spill]] %s2806_s1 }
   0x2   :  { %2818 = sst [smem:[#allocation20_spill]] %s2807_s2 }
   0x3   :  { %2819 = sst [smem:[#allocation21_spill]] %s2808_s3 }
   0x4   :  { %14 = vsyncpa [#allocation3], 0 }
   0x5   :  { %16 = vsyncpa [#allocation3 + $0x1], 0 }
   0x6   :  { %17 = vsyncpa [#allocation6], 0 }
   0x7   :  { %18 = vsyncpa [#allocation9], 0 }
   0x8   :  { %19 = vsyncpa [#allocation12], 0 }
   0x9   :  { %20 = vsyncpa [#allocation4], 0 }
   0xa   :  { %22 = vsyncpa [#allocation4 + $0x1], 0  ;;  %s2261_s30 = smov 0   ;;  %s2263_s10 = smov 0  }
   0xb   :  { %s2265_s11 = smov 0   ;;  %s2267_s12 = smov 0  }
   0xc LB: > { %s2820_s1 = sld [smem:[#allocation19_spill]]  ;;  %s2285_s16 = sadd.s32 4294967295, %s2200_s12   ;;  %s2200_s12 = sphi %s2267_s12, %s2835_s12   ;;  %s2196_s11 = sphi %s2265_s11, %s2834_s11   ;;  %s2192_s10 = sphi %s2263_s10, %s2833_s10   ;;  %s2188_s30 = sphi %s2261_s30, %s2832_s30  }
   0xd   : > { %p1512_p0 = scmp.ge.s32.totalorder %s2200_s12, 1  ;;  %p49_p1 = scmp.eq.s32.totalorder %s2285_s16, 0 }
   0xe   : > { %p253_p2 = scmp.lt.s32.totalorder %s2200_s12, 3  ;;  %s2202_s18 = smov [#allocation5]  }
   0xf   : > { %s266_s19 = sshll.u32 %s2202_s18, 4  ;;  %s2822_s3 = sld [smem:[#allocation21_spill]]  ;;  %s267_s19 = int_to_ptr.vmem [resolvable:$true] %s266_s19 }
  0x10   : > { %p2290_p3 = pnand %p1512_p0, %p253_p2  ;;  %s2824_s2 = sld [smem:[#allocation20_spill]] }
  0x11   : > { %s2203_s27 = smov [#allocation8]   ;;  %s2815_s29 = smov 64  }
  0x12   : > { %s264_s15 = sshll.u32 %s2820_s1, 4  ;;  %p1859_p4 = pneg %p2290_p3  ;;  %s265_s15 = int_to_ptr.hbm [resolvable:$true] %s264_s15 }
  0x13   : > { %s292_s28 = sshll.u32 %s2203_s27, 4  ;;  %s2816_s13 = smov 4   ;;  %s293_s28 = int_to_ptr.vmem [resolvable:$true] %s292_s28 }
  0x14   : > { %p2302_p6 = pnand %p1859_p4, %p49_p1  ;;  %s307_s20 = sshll.u32 %s2810_s5, 4  ;;  %s308_s20 = int_to_ptr.hbm [resolvable:$true] %s307_s20 }
  0x15   : > { %s290_s22 = sshll.u32 %s2822_s3, 4  ;;  %s2206_s21 = smov [#allocation7]   ;;  %s291_s22 = int_to_ptr.hbm [resolvable:$true] %s290_s22 }
  0x16   : > { %s279_s26 = sshll.u32 %s2824_s2, 4  ;;  %s281_s24 = sshll.u32 %s2206_s21, 4  ;;  %s280_s26 = int_to_ptr.hbm [resolvable:$true] %s279_s26  ;;  %s282_s24 = int_to_ptr.vmem [resolvable:$true] %s281_s24 }
  0x17   : > { %1862 = dma.hbm_to_vmem [thread:$0]  (!%p2302_p6), %s265_s15, 1024, %s267_s19, [#allocation6], %s2815_s29, %s2815_s29, %s2816_s13  }
  0x18   : > { %1868 = dma.hbm_to_vmem [thread:$0]  (!%p2302_p6), %s291_s22, 2048, %s293_s28, [#allocation9], %s2815_s29, %s2815_s29, %s2816_s13  }
  0x19   : > { %1865 = dma.hbm_to_vmem [thread:$0]  (!%p2302_p6), %s280_s26, 16, %s282_s24, [#allocation6]  }
  0x1a   : > { %s2207_s15 = smov [#allocation10]   ;;  %s324_s27 = sshll.u32 %s2812_s7, 4  ;;  %s325_s27 = int_to_ptr.hbm [resolvable:$true] %s324_s27 }
  0x1b   : > { %s309_s19 = sshll.u32 %s2207_s15, 4  ;;  %s2208_s26 = smov [#allocation11]   ;;  %s310_s19 = int_to_ptr.vmem [resolvable:$true] %s309_s19 }
  0x1c   : > { %1871 = dma.hbm_to_vmem [thread:$0]  (!%p2302_p6), %s308_s20, 2048, %s310_s19, [#allocation9], %s2815_s29, %s2815_s29, %s2816_s13  }
  0x1d   : > { %s326_s28 = sshll.u32 %s2208_s26, 4  ;;  %s1511_s14 = sadd.s32 4294967294, %s2200_s12   ;;  %s327_s28 = int_to_ptr.vmem [resolvable:$true] %s326_s28 }
  0x1e   : > { %1874 = dma.hbm_to_vmem [thread:$0]  (!%p2302_p6), %s325_s27, 1024, %s327_s28, [#allocation12], %s2815_s29, %s2815_s29, %s2816_s13  }
  0x1f   : > { %s2339_s18 = sadd.s32 1, %s2200_s12   ;;  %s35_s21 = sadd.s32 1, %s2196_s11 }
  0x20   : > { %s32_s24 = ssub.s32 %s2200_s12, %s2339_s18  ;;  %p42_p7 = scmp.ne.s32.totalorder %s2196_s11, %s2192_s10 }
  0x21   : > { %p33_p8 = scmp.eq.s32.totalorder %s32_s24, 0  ;;  %p43_p9 = scmp.eq.s32.totalorder %s2200_s12, 0 }
  0x22   : > { %p48_p10 = scmp.ne.s32.totalorder %s2192_s10, %s2188_s30  ;;  %p240_p11 = scmp.eq.s32.totalorder %s2285_s16, 1 }
  0x23   : > { %s2351_s20 = scalar_select %p33_p8, %s2196_s11, %s35_s21  }
  0x24   : > { %p2355_p12 = por %p49_p1, %p48_p10  ;;  %p2359_p13 = por %p240_p11, %p42_p7 }
  0x25   : > { %p246_p0 = scmp.eq.s32.totalorder %s1511_s14, 1  ;;  %p44_p2 = por %p43_p9, %p42_p7 }
  0x26   : > { %s343_s19 = sand.u32 1, %s2196_s11   ;;  %p1888_p6 = scmp.lt.s32.totalorder %s2200_s12, 2 }
  0x27   : > { %p2364_p4 = por %p246_p0, %p48_p10  ;;  %s1519_s25 = sshll.u32 %s343_s19, 6 }
  0x28   : > { %s1761_s27 = sshll.u32 %s2200_s12, 6  ;;  %s347_s29 = scalar_lea.vmem [#allocation2], %s1519_s25 }
  0x29   : > { %s352_s21 = scalar_lea.hbm %s2805_s0, %s1761_s27  ;;  %s355_s13 = sshll.u32 %s347_s29, 4  ;;  %s356_s13 = int_to_ptr.vmem [resolvable:$true] %s355_s13 }
  0x2a   : > { %s353_s24 = sshll.u32 %s352_s21, 4  ;;  %p2373_p8 = pnand %p1888_p6, %p44_p2  ;;  %s354_s24 = int_to_ptr.hbm [resolvable:$true] %s353_s24 }
  0x2b   : > { %s344_s1 = scalar_lea.sflag [#allocation3], %s343_s19  ;;  %s2092_s2 = sshra.s32 %s354_s24, 4  ;;  %s2093_s2 = int_to_ptr.hbm [resolvable:$true] %s2092_s2 }
  0x2c   : > { %s2094_s3 = scalar_lea.hbm %s2093_s2, 64  ;;  %p2096_p9 = pneg %p2373_p8 }
  0x2d   : > { %p2095_p7 = scmp.ne.s32.totalorder %s2093_s2, %s2094_s3  ;;  %s2099_s29 = scalar_lea.hbm %s2805_s0, 128 }
  0x2e   : > { %p2100_p0 = scmp.lt.s32.totalorder %s2093_s2, %s2805_s0  ;;  %p2101_p2 = scmp.lt.s32.totalorder %s2099_s29, %s2094_s3 }
  0x2f   : > { %p2097_p10 = pnand %p2096_p9, %p2095_p7 }
  0x30   : > { %p2102_p6 = por %p2101_p2, %p2100_p0 }
  0x31   : > { %p2098_p11 = pneg %p2097_p10 }
  0x33   : > { %p2103_p5 = pnand %p2102_p6, %p2098_p11 }
  0x35   : > { %2106 = shalt.err (!%p2103_p5)
}
  0x36   : > { %s2829_s19 = smov 4   ;;  %s2830_s21 = smov 64  }
  0x37   : > { %1878 = dma.hbm_to_vmem [thread:$0]  (!%p2373_p8), %s354_s24, 1024, %s356_s13, %s344_s1, %s2830_s21, %s2830_s21, %s2829_s19  }
  0x38   : > { %367 = sbr.rel (%p2290_p3) target bundleno = 1068 (0x42c), region = 56  ;;  %s2393_s27 = sand.u32 (!%p2290_p3), 1, %s2192_s10  }
  0x39   : > { %s1523_s2 = sshll.u32 (!%p2290_p3), %s2393_s27, 6  ;;  %s370_s3 = scalar_lea.sflag (!%p2290_p3), [#allocation3], %s2393_s27 }
  0x3a   : > { %s2397_s26 = scalar_lea.vmem (!%p2290_p3), [#allocation2], %s1523_s2 }
  0x3d   : > { %2167 = dma.done.wait (%p2355_p12), %s370_s3, 1024  }
  0x3e   : > { %2169 = vsyncadd (%p2355_p12), %s370_s3, 4294966272 }
  0x3f   : > { %2171 = dma.done.wait (%p49_p1), [#allocation6], 1040  }
  0x40   : > { %2173 = vsyncadd (%p49_p1), [#allocation6], 4294966256 }
  0x41   : > { %2175 = dma.done.wait (%p49_p1), [#allocation9], 4096  }
  0x42   : > { %2177 = vsyncadd (%p49_p1), [#allocation9], 4294963200 }
  0x43   : > { %2179 = dma.done.wait (%p49_p1), [#allocation12], 1024  }
  0x44   : > { %2181 = vsyncadd (%p49_p1), [#allocation12], 4294966272  ;;  %v1777_v0 = vld [vmem:[#allocation5 + $0x38] sm:$0xff]  ;;  %v1776_v1 = vld [vmem:[#allocation5 + $0x30] sm:$0xff]  ;;  %s1529_s28 = sshll.u32 %s2393_s27, 7  ;;  %s1818_s3 = sshll.u32 %s2285_s16, 7 }
  0x45   : > { %568 = vmatpush.bf16.msra.mxu0 %v1777_v0  ;;  %1819 = vmatpush.bf16.msra.mxu2 %v1777_v0  ;;  %v1775_v2 = vld [vmem:[#allocation5 + $0x28] sm:$0xff]  ;;  %v1774_v3 = vld [vmem:[#allocation5 + $0x20] sm:$0xff]  ;;  %v1773_v4 = vld [vmem:[#allocation5 + $0x18] sm:$0xff]  ;;  %s2753_s2 = scalar_lea.vmem [#allocation13], %s1529_s28  ;;  %s1386_s17 = scalar_lea.hbm %s2814_s9, %s1818_s3 }
  0x46   : > { %v1772_v5 = vld [vmem:[#allocation5 + $0x10] sm:$0xff]  ;;  %v1771_v6 = vld [vmem:[#allocation5 + $0x8] sm:$0xff]  ;;  %v1770_v7 = vld [vmem:[#allocation5] sm:$0xff]  ;;  %s1387_s13 = sshll.u32 %s2753_s2, 4  ;;  %s1389_s23 = sshll.u32 %s1386_s17, 4  ;;  %s1388_s13 = int_to_ptr.vmem [resolvable:$true] %s1387_s13  ;;  %s1390_s23 = int_to_ptr.hbm [resolvable:$true] %s1389_s23 }
  0x47   : > { %v1762_v8 = vld [vmem:[%s2397_s26] sm:$0xff]  ;;  %v1763_v10 = vld [vmem:[%s2397_s26 + $0x8] sm:$0xff]  ;;  %v1784_v13 = vld [vmem:[#allocation8 + $0x30] sm:$0xff]  ;;  %s1375_s24 = scalar_lea.sflag [#allocation4], %s2393_s27  ;;  %s2136_s14 = sshra.s32 %s1390_s23, 4  ;;  %s2137_s14 = int_to_ptr.hbm [resolvable:$true] %s2136_s14 }
  0x48   : > { %v1766_v9 = vld [vmem:[%s2397_s26 + $0x20] sm:$0xff]  ;;  %v1767_v11 = vld [vmem:[%s2397_s26 + $0x28] sm:$0xff]  ;;  %v1764_v15 = vld [vmem:[%s2397_s26 + $0x10] sm:$0xff]  ;;  %s2138_s29 = scalar_lea.hbm %s2137_s14, 128  ;;  %s2142_s28 = scalar_lea.hbm %s2814_s9, 256 }
  0x49   : > { %569 = vmatpush.bf16.msra.mxu0 %v1776_v1  ;;  %1820 = vmatpush.bf16.msra.mxu2 %v1776_v1  ;;  %v1785_v12 = vld [vmem:[#allocation8 + $0x38] sm:$0xff]  ;;  %v1783_v14 = vld [vmem:[#allocation8 + $0x28] sm:$0xff]  ;;  %v1782_v16 = vld [vmem:[#allocation8 + $0x20] sm:$0xff]  ;;  %p2139_p1 = scmp.ne.s32.totalorder %s2137_s14, %s2138_s29  ;;  %p2143_p12 = scmp.lt.s32.totalorder %s2137_s14, %s2814_s9 }
  0x4a   : > { %709 = vmatpush.bf16.msra.mxu1 %v1785_v12  ;;  %1827 = vmatpush.bf16.msra.mxu3 %v1785_v12  ;;  %v1768_v17 = vld [vmem:[%s2397_s26 + $0x30] sm:$0xff]  ;;  %v1765_v18 = vld [vmem:[%s2397_s26 + $0x18] sm:$0xff]  ;;  %v1778_v23 = vld [vmem:[#allocation8] sm:$0xff]  ;;  %p2144_p8 = scmp.lt.s32.totalorder %s2142_s28, %s2138_s29 }
  0x4b   : > { %v1769_v19 = vld [vmem:[%s2397_s26 + $0x38] sm:$0xff]  ;;  %v1779_v22 = vld [vmem:[#allocation8 + $0x8] sm:$0xff]  ;;  %v2423_v25 = vld [vmem:[#allocation7] ss:$0 sm:$0xff]  ;;  %p2140_p3 = pnand %p2139_p1, %p2359_p13 }
  0x4c   : > { %v1781_v20 = vld [vmem:[#allocation8 + $0x18] sm:$0xff]  ;;  %v1780_v21 = vld [vmem:[#allocation8 + $0x10] sm:$0xff]  ;;  %v1791_v59 = vld [vmem:[#allocation10 + $0x28] sm:$0xff]  ;;  %p2145_p7 = por %p2144_p8, %p2143_p12 }
  0x4d   : > { %570 = vmatpush.bf16.msra.mxu0 %v1775_v2  ;;  %1821 = vmatpush.bf16.msra.mxu2 %v1775_v2  ;;  %v1793_v48 = vld [vmem:[#allocation10 + $0x38] sm:$0xff]  ;;  %v1792_v54 = vld [vmem:[#allocation10 + $0x30] sm:$0xff]  ;;  %v1790_v63 = vld [vmem:[#allocation10 + $0x20] sm:$0xff]  ;;  %p2141_p5 = pneg %p2140_p3 }
  0x4e   : > { %710 = vmatpush.bf16.msra.mxu1 %v1784_v13  ;;  %1828 = vmatpush.bf16.msra.mxu3 %v1784_v13  ;;  %v1789_v2 = vld [vmem:[#allocation10 + $0x18] sm:$0xff] }
  0x4f   : > { %p2146_p9 = pnand %p2145_p7, %p2141_p5 }
  0x51   : > { %571 = vmatpush.bf16.msra.mxu0 %v1774_v3  ;;  %1822 = vmatpush.bf16.msra.mxu2 %v1774_v3 }
  0x52   : > { %711 = vmatpush.bf16.msra.mxu1 %v1783_v14  ;;  %1829 = vmatpush.bf16.msra.mxu3 %v1783_v14 }
  0x55   : > { %572 = vmatpush.bf16.msra.mxu0 %v1773_v4  ;;  %1823 = vmatpush.bf16.msra.mxu2 %v1773_v4 }
  0x56   : > { %712 = vmatpush.bf16.msra.mxu1 %v1782_v16  ;;  %1830 = vmatpush.bf16.msra.mxu3 %v1782_v16 }
  0x59   : > { %573 = vmatpush.bf16.msra.mxu0 %v1772_v5  ;;  %1824 = vmatpush.bf16.msra.mxu2 %v1772_v5 }
  0x5a   : > { %713 = vmatpush.bf16.msra.mxu1 %v1781_v20  ;;  %1831 = vmatpush.bf16.msra.mxu3 %v1781_v20 }
  0x5d   : > { %574 = vmatpush.bf16.msra.mxu0 %v1771_v6  ;;  %1825 = vmatpush.bf16.msra.mxu2 %v1771_v6 }
  0x5e   : > { %714 = vmatpush.bf16.msra.mxu1 %v1780_v21  ;;  %1832 = vmatpush.bf16.msra.mxu3 %v1780_v21 }
  0x61   : > { %575 = vmatpush.bf16.msra.mxu0 %v1770_v7  ;;  %1826 = vmatpush.bf16.msra.mxu2 %v1770_v7  ;;  %v1788_v7 = vld [vmem:[#allocation10 + $0x10] sm:$0xff] }
  0x62   : > { %715 = vmatpush.bf16.msra.mxu1 %v1779_v22  ;;  %1833 = vmatpush.bf16.msra.mxu3 %v1779_v22 }
  0x64   : > { %576 = vmatmul.bf16.vlgmr.msra.gmra.mxu0 %v1762_v8  ;;  %596 = vmatmul.bf16.vlgmr.msra.gmra.mxu2 %v1766_v9 }
  0x65   : > { %850 = vmatpush.bf16.msrb.mxu2 %v1793_v48 }
  0x66   : > { %716 = vmatpush.bf16.msra.mxu1 %v1778_v23  ;;  %1834 = vmatpush.bf16.msra.mxu3 %v1778_v23 }
  0x69   : > { %851 = vmatpush.bf16.msrb.mxu2 %v1792_v54 }
  0x6d   : > { %852 = vmatpush.bf16.msrb.mxu2 %v1791_v59 }
  0x71   : > { %853 = vmatpush.bf16.msrb.mxu2 %v1790_v63 }
  0x74   : > { %581 = vmatmul.bf16.gmra.mxu0 %v1763_v10  ;;  %601 = vmatmul.bf16.gmra.mxu2 %v1767_v11  ;;  %v1787_v11 = vld [vmem:[#allocation10 + $0x8] sm:$0xff] }
  0x75   : > { %854 = vmatpush.bf16.msrb.mxu2 %v1789_v2 }
  0x79   : > { %855 = vmatpush.bf16.msrb.mxu2 %v1788_v7 }
  0x7d   : > { %856 = vmatpush.bf16.msrb.mxu2 %v1787_v11 }
  0x84   : > { %586 = vmatmul.bf16.gmra.mxu0 %v1764_v15  ;;  %606 = vmatmul.bf16.gmra.mxu2 %v1768_v17 }
  0x94   : > { %591 = vmatmul.bf16.gmra.mxu0 %v1765_v18  ;;  %611 = vmatmul.bf16.gmra.mxu2 %v1769_v19 }
  0xe1   : > { %v577_v24 = vpop.f32.mrf.mxu0 }
  0xe2   : > { %v2426_v26 = vadd.f32 %v2423_v25, %v577_v24  ;;  %v1786_v24 = vld [vmem:[#allocation10] sm:$0xff] }
  0xe3   : > { %857 = vmatpush.bf16.msrb.mxu2 %v1786_v24  ;;  %v1801_v24 = vld [vmem:[#allocation8 + $0x78] sm:$0xff] }
  0xe4   : > { %v617_v30 = vmax.f32 %v2426_v26, 0.0  ;;  %1009 = vmatpush.bf16.msrb.mxu3 %v1801_v24 }
  0xe7   : > { %v597_v29 = vpop.f32.mrf.mxu2 }
  0xe8   : > { %v2438_v33 = vadd.f32 %v2423_v25, %v597_v29  ;;  %v2524_v29 = vld [vmem:[%s2809_s4] ss:$0 sm:$0xff] }
  0xe9   : > { %v579_v27 = vpop.f32.mrf.mxu0 }
  0xea   : > { %v2429_v28 = vadd.f32 %v2423_v25, %v579_v27  ;;  %v625_v36 = vmax.f32 %v2438_v33, 0.0 }
  0xec   : > { %v618_v31 = vmax.f32 %v2429_v28, 0.0 }
  0xee   : > { %v633_v32 = vpack.c.bf16 %v618_v31, %v617_v30 }
  0xef   : > { %v599_v35 = vpop.f32.mrf.mxu2 }
  0xf0   : > { %717 = vmatmul.bf16.vlgmr.msra.gmra.mxu1 %v633_v32  ;;  %v2442_v37 = vadd.f32 %v2423_v25, %v599_v35 }
  0xf1   : > { %v582_v34 = vpop.f32.mrf.mxu0 }
  0xf2   : > { %v626_v38 = vmax.f32 %v2442_v37, 0.0  ;;  %v2446_v39 = vadd.f32 %v2423_v25, %v582_v34 }
  0xf4   : > { %v637_v40 = vpack.c.bf16 %v626_v38, %v625_v36  ;;  %v619_v44 = vmax.f32 %v2446_v39, 0.0 }
  0xf6   : > { %737 = vmatmul.bf16.vlgmr.msra.gmra.mxu3 %v637_v40 }
  0xf7   : > { %v602_v43 = vpop.f32.mrf.mxu2 }
  0xf8   : > { %v2462_v47 = vadd.f32 %v2423_v25, %v602_v43 }
  0xf9   : > { %v584_v41 = vpop.f32.mrf.mxu0 }
  0xfa   : > { %v2453_v42 = vadd.f32 %v2423_v25, %v584_v41  ;;  %v627_v51 = vmax.f32 %v2462_v47, 0.0 }
  0xfc   : > { %v620_v45 = vmax.f32 %v2453_v42, 0.0 }
  0xfe   : > { %v634_v46 = vpack.c.bf16 %v620_v45, %v619_v44 }
  0xff   : > { %v604_v50 = vpop.f32.mrf.mxu2 }
 0x100   : > { %722 = vmatmul.bf16.gmra.mxu1 %v634_v46  ;;  %v2466_v52 = vadd.f32 %v2423_v25, %v604_v50 }
 0x101   : > { %v587_v49 = vpop.f32.mrf.mxu0 }
 0x102   : > { %v628_v53 = vmax.f32 %v2466_v52, 0.0  ;;  %v2470_v55 = vadd.f32 %v2423_v25, %v587_v49 }
 0x104   : > { %v638_v56 = vpack.c.bf16 %v628_v53, %v627_v51  ;;  %v621_v61 = vmax.f32 %v2470_v55, 0.0 }
 0x106   : > { %742 = vmatmul.bf16.gmra.mxu3 %v638_v56 }
 0x107   : > { %v607_v60 = vpop.f32.mrf.mxu2 }
 0x108   : > { %v2486_v1 = vadd.f32 %v2423_v25, %v607_v60 }
 0x109   : > { %v589_v57 = vpop.f32.mrf.mxu0 }
 0x10a   : > { %v2477_v58 = vadd.f32 %v2423_v25, %v589_v57  ;;  %v629_v5 = vmax.f32 %v2486_v1, 0.0 }
 0x10c   : > { %v622_v62 = vmax.f32 %v2477_v58, 0.0 }
 0x10e   : > { %v635_v0 = vpack.c.bf16 %v622_v62, %v621_v61 }
 0x10f   : > { %v609_v4 = vpop.f32.mrf.mxu2 }
 0x110   : > { %727 = vmatmul.bf16.gmra.mxu1 %v635_v0  ;;  %v2490_v6 = vadd.f32 %v2423_v25, %v609_v4 }
 0x111   : > { %v592_v3 = vpop.f32.mrf.mxu0 }
 0x112   : > { %v630_v8 = vmax.f32 %v2490_v6, 0.0  ;;  %v2494_v9 = vadd.f32 %v2423_v25, %v592_v3 }
 0x114   : > { %v639_v10 = vpack.c.bf16 %v630_v8, %v629_v5  ;;  %v623_v15 = vmax.f32 %v2494_v9, 0.0 }
 0x116   : > { %747 = vmatmul.bf16.gmra.mxu3 %v639_v10 }
 0x117   : > { %v612_v14 = vpop.f32.mrf.mxu2 }
 0x118   : > { %v2510_v18 = vadd.f32 %v2423_v25, %v612_v14 }
 0x119   : > { %v594_v12 = vpop.f32.mrf.mxu0 }
 0x11a   : > { %v2501_v13 = vadd.f32 %v2423_v25, %v594_v12  ;;  %v631_v20 = vmax.f32 %v2510_v18, 0.0 }
 0x11c   : > { %v624_v16 = vmax.f32 %v2501_v13, 0.0 }
 0x11e   : > { %v636_v17 = vpack.c.bf16 %v624_v16, %v623_v15 }
 0x11f   : > { %v614_v19 = vpop.f32.mrf.mxu2 }
 0x120   : > { %732 = vmatmul.bf16.gmra.mxu1 %v636_v17  ;;  %v2514_v21 = vadd.f32 %v2423_v25, %v614_v19 }
 0x122   : > { %v632_v22 = vmax.f32 %v2514_v21, 0.0 }
 0x124   : > { %v640_v23 = vpack.c.bf16 %v632_v22, %v631_v20 }
 0x126   : > { %752 = vmatmul.bf16.gmra.mxu3 %v640_v23 }
 0x16d   : > { %v718_v27 = vpop.f32.mrf.mxu1 }
 0x16e   : > { %v719_v32 = vadd.f32 %v2524_v29, %v718_v27 }
 0x170   : > { %v758_v35 = vmax.f32 %v719_v32, 0.0  ;;  %v1800_v32 = vld [vmem:[#allocation8 + $0x70] sm:$0xff] }
 0x171   : > { %1010 = vmatpush.bf16.msrb.mxu3 %v1800_v32  ;;  %v1794_v32 = vld [vmem:[#allocation8 + $0x40] sm:$0xff] }
 0x175   : > { %v720_v25 = vpop.f32.mrf.mxu1 }
 0x176   : > { %v721_v34 = vadd.f32 %v2524_v29, %v720_v25 }
 0x178   : > { %v759_v40 = vmax.f32 %v721_v34, 0.0 }
 0x179   : > { %v738_v3 = vpop.f32.mrf.mxu3 }
 0x17a   : > { %v774_v41 = vpack.c.bf16 %v759_v40, %v758_v35  ;;  %v739_v25 = vadd.f32 %v2524_v29, %v738_v3 }
 0x17c   : > { %858 = vmatmul.bf16.vlgmr.msrb.gmra.mxu2 %v774_v41  ;;  %v766_v35 = vmax.f32 %v739_v25, 0.0 }
 0x17d   : > { %v723_v43 = vpop.f32.mrf.mxu1 }
 0x17e   : > { %v724_v46 = vadd.f32 %v2524_v29, %v723_v43 }
 0x180   : > { %v760_v50 = vmax.f32 %v724_v46, 0.0  ;;  %v1799_v46 = vld [vmem:[#allocation8 + $0x68] sm:$0xff] }
 0x181   : > { %v740_v10 = vpop.f32.mrf.mxu3  ;;  %1011 = vmatpush.bf16.msrb.mxu3 %v1799_v46 }
 0x182   : > { %v741_v34 = vadd.f32 %v2524_v29, %v740_v10 }
 0x184   : > { %v767_v40 = vmax.f32 %v741_v34, 0.0  ;;  %v2545_v34 = vld [vmem:[%s2811_s6] ss:$0 sm:$0xff] }
 0x185   : > { %v725_v48 = vpop.f32.mrf.mxu1 }
 0x186   : > { %v726_v49 = vadd.f32 %v2524_v29, %v725_v48  ;;  %v778_v43 = vpack.c.bf16 %v767_v40, %v766_v35  ;;  %v1798_v48 = vld [vmem:[#allocation8 + $0x60] sm:$0xff] }
 0x187   : > { %1012 = vmatpush.bf16.msrb.mxu3 %v1798_v48 }
 0x188   : > { %v761_v54 = vmax.f32 %v726_v49, 0.0 }
 0x189   : > { %v743_v27 = vpop.f32.mrf.mxu3 }
 0x18a   : > { %v775_v56 = vpack.c.bf16 %v761_v54, %v760_v50  ;;  %v744_v50 = vadd.f32 %v2524_v29, %v743_v27 }
 0x18c   : > { %863 = vmatmul.bf16.gmra.mxu2 %v775_v56  ;;  %v768_v56 = vmax.f32 %v744_v50, 0.0 }
 0x18d   : > { %v728_v57 = vpop.f32.mrf.mxu1 }
 0x18e   : > { %v729_v59 = vadd.f32 %v2524_v29, %v728_v57 }
 0x190   : > { %v762_v0 = vmax.f32 %v729_v59, 0.0 }
 0x191   : > { %v745_v41 = vpop.f32.mrf.mxu3 }
 0x192   : > { %v746_v54 = vadd.f32 %v2524_v29, %v745_v41 }
 0x194   : > { %v769_v57 = vmax.f32 %v746_v54, 0.0 }
 0x195   : > { %v730_v60 = vpop.f32.mrf.mxu1 }
 0x196   : > { %v731_v63 = vadd.f32 %v2524_v29, %v730_v60  ;;  %v779_v59 = vpack.c.bf16 %v769_v57, %v768_v56 }
 0x198   : > { %v763_v2 = vmax.f32 %v731_v63, 0.0  ;;  %v1797_v63 = vld [vmem:[#allocation8 + $0x58] sm:$0xff] }
 0x199   : > { %v748_v49 = vpop.f32.mrf.mxu3  ;;  %1013 = vmatpush.bf16.msrb.mxu3 %v1797_v63 }
 0x19a   : > { %v776_v4 = vpack.c.bf16 %v763_v2, %v762_v0  ;;  %v1796_v0 = vld [vmem:[#allocation8 + $0x50] sm:$0xff]  ;;  %v749_v2 = vadd.f32 %v2524_v29, %v748_v49 }
 0x19c   : > { %868 = vmatmul.bf16.gmra.mxu2 %v776_v4 }
 0x19d   : > { %v733_v7 = vpop.f32.mrf.mxu1  ;;  %1014 = vmatpush.bf16.msrb.mxu3 %v1796_v0 }
 0x19e   : > { %v734_v11 = vadd.f32 %v2524_v29, %v733_v7  ;;  %v770_v7 = vmax.f32 %v749_v2, 0.0 }
 0x1a0   : > { %v764_v17 = vmax.f32 %v734_v11, 0.0 }
 0x1a1   : > { %v750_v60 = vpop.f32.mrf.mxu3 }
 0x1a2   : > { %v751_v3 = vadd.f32 %v2524_v29, %v750_v60 }
 0x1a4   : > { %v771_v10 = vmax.f32 %v751_v3, 0.0 }
 0x1a5   : > { %v735_v12 = vpop.f32.mrf.mxu1 }
 0x1a6   : > { %v736_v14 = vadd.f32 %v2524_v29, %v735_v12  ;;  %v780_v11 = vpack.c.bf16 %v771_v10, %v770_v7 }
 0x1a8   : > { %v765_v19 = vmax.f32 %v736_v14, 0.0 }
 0x1a9   : > { %v753_v4 = vpop.f32.mrf.mxu3 }
 0x1aa   : > { %v777_v23 = vpack.c.bf16 %v765_v19, %v764_v17  ;;  %v754_v14 = vadd.f32 %v2524_v29, %v753_v4  ;;  %v1795_v19 = vld [vmem:[#allocation8 + $0x48] sm:$0xff] }
 0x1ab   : > { %1015 = vmatpush.bf16.msrb.mxu3 %v1795_v19 }
 0x1ac   : > { %873 = vmatmul.bf16.gmra.mxu2 %v777_v23  ;;  %v772_v23 = vmax.f32 %v754_v14, 0.0 }
 0x1af   : > { %1016 = vmatpush.bf16.msrb.mxu3 %v1794_v32 }
 0x1b1   : > { %v755_v12 = vpop.f32.mrf.mxu3 }
 0x1b2   : > { %v756_v17 = vadd.f32 %v2524_v29, %v755_v12 }
 0x1b4   : > { %v773_v24 = vmax.f32 %v756_v17, 0.0 }
 0x1b6   : > { %v781_v27 = vpack.c.bf16 %v773_v24, %v772_v23 }
 0x1bc   : > { %878 = vmatmul.bf16.gmra.mxu2 %v778_v43 }
 0x1cc   : > { %883 = vmatmul.bf16.gmra.mxu2 %v779_v59 }
 0x1dc   : > { %888 = vmatmul.bf16.gmra.mxu2 %v780_v11 }
 0x1ec   : > { %893 = vmatmul.bf16.gmra.mxu2 %v781_v27  ;;  %v1808_v27 = vld [vmem:[#allocation10 + $0x70] sm:$0xff] }
 0x1ff   : > { %v859_v25 = vpop.f32.mrf.mxu2 }
 0x200   : > { %v860_v35 = vadd.f32 %v2545_v34, %v859_v25  ;;  %v1807_v25 = vld [vmem:[#allocation10 + $0x68] sm:$0xff] }
 0x202   : > { %v2550_v29 = vadd.f32 %v860_v35, %v617_v30 }
 0x204   : > { %v915_v46 = vmax.f32 %v2550_v29, 0.0 }
 0x207   : > { %v861_v40 = vpop.f32.mrf.mxu2 }
 0x208   : > { %v862_v41 = vadd.f32 %v2545_v34, %v861_v40 }
 0x20a   : > { %v2555_v43 = vadd.f32 %v862_v41, %v618_v31 }
 0x20c   : > { %v916_v48 = vmax.f32 %v2555_v43, 0.0 }
 0x20e   : > { %v931_v49 = vpack.c.bf16 %v916_v48, %v915_v46 }
 0x20f   : > { %v864_v50 = vpop.f32.mrf.mxu2 }
 0x210   : > { %1017 = vmatmul.bf16.vlgmr.msrb.gmra.mxu3 %v931_v49  ;;  %v865_v26 = vadd.f32 %v2545_v34, %v864_v50  ;;  %v1806_v50 = vld [vmem:[#allocation10 + $0x60] sm:$0xff] }
 0x212   : > { %v2566_v54 = vadd.f32 %v865_v26, %v619_v44 }
 0x214   : > { %v917_v56 = vmax.f32 %v2566_v54, 0.0 }
 0x217   : > { %v866_v30 = vpop.f32.mrf.mxu2 }
 0x218   : > { %v867_v28 = vadd.f32 %v2545_v34, %v866_v30  ;;  %v1804_v30 = vld [vmem:[#allocation10 + $0x50] sm:$0xff] }
 0x21a   : > { %v2571_v31 = vadd.f32 %v867_v28, %v620_v45 }
 0x21c   : > { %v918_v57 = vmax.f32 %v2571_v31, 0.0 }
 0x21e   : > { %v932_v59 = vpack.c.bf16 %v918_v57, %v917_v56 }
 0x21f   : > { %v869_v60 = vpop.f32.mrf.mxu2 }
 0x220   : > { %1022 = vmatmul.bf16.gmra.mxu3 %v932_v59  ;;  %v870_v39 = vadd.f32 %v2545_v34, %v869_v60 }
 0x222   : > { %v2582_v63 = vadd.f32 %v870_v39, %v621_v61 }
 0x224   : > { %v919_v0 = vmax.f32 %v2582_v63, 0.0 }
 0x227   : > { %v871_v44 = vpop.f32.mrf.mxu2 }
 0x228   : > { %v872_v42 = vadd.f32 %v2545_v34, %v871_v44 }
 0x22a   : > { %v2587_v45 = vadd.f32 %v872_v42, %v622_v62 }
 0x22c   : > { %v920_v2 = vmax.f32 %v2587_v45, 0.0 }
 0x22e   : > { %v933_v3 = vpack.c.bf16 %v920_v2, %v919_v0 }
 0x22f   : > { %v874_v4 = vpop.f32.mrf.mxu2 }
 0x230   : > { %1027 = vmatmul.bf16.gmra.mxu3 %v933_v3  ;;  %v875_v55 = vadd.f32 %v2545_v34, %v874_v4 }
 0x232   : > { %v2598_v7 = vadd.f32 %v875_v55, %v623_v15  ;;  %v1809_v15 = vld [vmem:[#allocation10 + $0x78] sm:$0xff] }
 0x233   : > { %1152 = vmatpush.bf16.msrb.mxu0 %v1809_v15 }
 0x234   : > { %v921_v10 = vmax.f32 %v2598_v7, 0.0 }
 0x237   : > { %v876_v61 = vpop.f32.mrf.mxu2  ;;  %1153 = vmatpush.bf16.msrb.mxu0 %v1808_v27 }
 0x238   : > { %v877_v58 = vadd.f32 %v2545_v34, %v876_v61 }
 0x23a   : > { %v2603_v62 = vadd.f32 %v877_v58, %v624_v16 }
 0x23b   : > { %1154 = vmatpush.bf16.msrb.mxu0 %v1807_v25 }
 0x23c   : > { %v922_v11 = vmax.f32 %v2603_v62, 0.0 }
 0x23e   : > { %v934_v12 = vpack.c.bf16 %v922_v11, %v921_v10 }
 0x23f   : > { %v879_v14 = vpop.f32.mrf.mxu2  ;;  %1155 = vmatpush.bf16.msrb.mxu0 %v1806_v50 }
 0x240   : > { %1032 = vmatmul.bf16.gmra.mxu3 %v934_v12  ;;  %v880_v9 = vadd.f32 %v2545_v34, %v879_v14 }
 0x242   : > { %v2614_v13 = vadd.f32 %v880_v9, %v625_v36 }
 0x244   : > { %v923_v23 = vmax.f32 %v2614_v13, 0.0 }
 0x247   : > { %v881_v17 = vpop.f32.mrf.mxu2 }
 0x248   : > { %v882_v16 = vadd.f32 %v2545_v34, %v881_v17 }
 0x24a   : > { %v2619_v19 = vadd.f32 %v882_v16, %v626_v38 }
 0x24c   : > { %v924_v24 = vmax.f32 %v2619_v19, 0.0 }
 0x24e   : > { %v935_v32 = vpack.c.bf16 %v924_v24, %v923_v23 }
 0x24f   : > { %v884_v33 = vpop.f32.mrf.mxu2 }
 0x250   : > { %1037 = vmatmul.bf16.gmra.mxu3 %v935_v32  ;;  %v885_v36 = vadd.f32 %v2545_v34, %v884_v33 }
 0x252   : > { %v2630_v38 = vadd.f32 %v885_v36, %v627_v51  ;;  %v1805_v51 = vld [vmem:[#allocation10 + $0x58] sm:$0xff] }
 0x253   : > { %1156 = vmatpush.bf16.msrb.mxu0 %v1805_v51 }
 0x254   : > { %v925_v41 = vmax.f32 %v2630_v38, 0.0 }
 0x257   : > { %v886_v37 = vpop.f32.mrf.mxu2  ;;  %1157 = vmatpush.bf16.msrb.mxu0 %v1804_v30 }
 0x258   : > { %v887_v35 = vadd.f32 %v2545_v34, %v886_v37 }
 0x25a   : > { %v2635_v40 = vadd.f32 %v887_v35, %v628_v53  ;;  %v1803_v53 = vld [vmem:[#allocation10 + $0x48] sm:$0xff] }
 0x25b   : > { %1158 = vmatpush.bf16.msrb.mxu0 %v1803_v53 }
 0x25c   : > { %v926_v49 = vmax.f32 %v2635_v40, 0.0 }
 0x25e   : > { %v936_v26 = vpack.c.bf16 %v926_v49, %v925_v41 }
 0x25f   : > { %v889_v47 = vpop.f32.mrf.mxu2 }
 0x260   : > { %1042 = vmatmul.bf16.gmra.mxu3 %v936_v26  ;;  %v890_v52 = vadd.f32 %v2545_v34, %v889_v47 }
 0x262   : > { %v2646_v59 = vadd.f32 %v890_v52, %v629_v5  ;;  %v1802_v5 = vld [vmem:[#allocation10 + $0x40] sm:$0xff] }
 0x263   : > { %1159 = vmatpush.bf16.msrb.mxu0 %v1802_v5  ;;  %v1817_v5 = vld [vmem:[#allocation11 + $0x38] sm:$0xff] }
 0x264   : > { %v927_v44 = vmax.f32 %v2646_v59, 0.0  ;;  %1309 = vmatpush.bf16.msrb.mxu1 %v1817_v5 }
 0x267   : > { %v891_v28 = vpop.f32.mrf.mxu2 }
 0x268   : > { %v892_v60 = vadd.f32 %v2545_v34, %v891_v28 }
 0x26a   : > { %v2651_v39 = vadd.f32 %v892_v60, %v630_v8 }
 0x26c   : > { %v928_v42 = vmax.f32 %v2651_v39, 0.0 }
 0x26e   : > { %v937_v3 = vpack.c.bf16 %v928_v42, %v927_v44 }
 0x26f   : > { %v894_v4 = vpop.f32.mrf.mxu2 }
 0x270   : > { %1047 = vmatmul.bf16.gmra.mxu3 %v937_v3  ;;  %v895_v1 = vadd.f32 %v2545_v34, %v894_v4 }
 0x272   : > { %v2662_v6 = vadd.f32 %v895_v1, %v631_v20  ;;  %v2678_v20 = vld [vmem:[%s2809_s4 + $0x1] ss:$0 sm:$0xff] }
 0x274   : > { %v929_v58 = vmax.f32 %v2662_v6, 0.0 }
 0x277   : > { %v896_v55 = vpop.f32.mrf.mxu2 }
 0x278   : > { %v897_v8 = vadd.f32 %v2545_v34, %v896_v55 }
 0x27a   : > { %v2667_v61 = vadd.f32 %v897_v8, %v632_v22 }
 0x27c   : > { %v930_v12 = vmax.f32 %v2667_v61, 0.0 }
 0x27e   : > { %v938_v14 = vpack.c.bf16 %v930_v12, %v929_v58 }
 0x280   : > { %1052 = vmatmul.bf16.gmra.mxu3 %v938_v14  ;;  %v1816_v14 = vld [vmem:[#allocation11 + $0x30] sm:$0xff] }
 0x281   : > { %1310 = vmatpush.bf16.msrb.mxu1 %v1816_v14 }
 0x293   : > { %v1018_v18 = vpop.f32.mrf.mxu3 }
 0x294   : > { %v1019_v21 = vadd.f32 %v2678_v20, %v1018_v18 }
 0x296   : > { %v1058_v9 = vmax.f32 %v1019_v21, 0.0 }
 0x29b   : > { %v1020_v22 = vpop.f32.mrf.mxu3 }
 0x29c   : > { %v1021_v34 = vadd.f32 %v2678_v20, %v1020_v22 }
 0x29e   : > { %v1059_v15 = vmax.f32 %v1021_v34, 0.0 }
 0x2a0   : > { %v1074_v17 = vpack.c.bf16 %v1059_v15, %v1058_v9  ;;  %v1815_v15 = vld [vmem:[#allocation11 + $0x28] sm:$0xff] }
 0x2a1   : > { %1311 = vmatpush.bf16.msrb.mxu1 %v1815_v15 }
 0x2a2   : > { %1160 = vmatmul.bf16.vlgmr.msrb.gmra.mxu0 %v1074_v17 }
 0x2a3   : > { %v1023_v16 = vpop.f32.mrf.mxu3 }
 0x2a4   : > { %v1024_v27 = vadd.f32 %v2678_v20, %v1023_v16 }
 0x2a6   : > { %v1060_v36 = vmax.f32 %v1024_v27, 0.0  ;;  %v1814_v27 = vld [vmem:[#allocation11 + $0x20] sm:$0xff] }
 0x2a7   : > { %1312 = vmatpush.bf16.msrb.mxu1 %v1814_v27 }
 0x2ab   : > { %v1025_v32 = vpop.f32.mrf.mxu3 }
 0x2ac   : > { %v1026_v33 = vadd.f32 %v2678_v20, %v1025_v32 }
 0x2ae   : > { %v1061_v25 = vmax.f32 %v1026_v33, 0.0 }
 0x2b0   : > { %v1075_v37 = vpack.c.bf16 %v1061_v25, %v1060_v36 }
 0x2b2   : > { %1165 = vmatmul.bf16.gmra.mxu0 %v1075_v37 }
 0x2b3   : > { %v1028_v35 = vpop.f32.mrf.mxu3 }
 0x2b4   : > { %v1029_v50 = vadd.f32 %v2678_v20, %v1028_v35  ;;  %v1813_v35 = vld [vmem:[#allocation11 + $0x18] sm:$0xff] }
 0x2b5   : > { %1313 = vmatpush.bf16.msrb.mxu1 %v1813_v35 }
 0x2b6   : > { %v1062_v51 = vmax.f32 %v1029_v50, 0.0 }
 0x2bb   : > { %v1030_v26 = vpop.f32.mrf.mxu3 }
 0x2bc   : > { %v1031_v47 = vadd.f32 %v2678_v20, %v1030_v26  ;;  %v1812_v26 = vld [vmem:[#allocation11 + $0x10] sm:$0xff] }
 0x2bd   : > { %1314 = vmatpush.bf16.msrb.mxu1 %v1812_v26 }
 0x2be   : > { %v1063_v30 = vmax.f32 %v1031_v47, 0.0 }
 0x2c0   : > { %v1076_v52 = vpack.c.bf16 %v1063_v30, %v1062_v51 }
 0x2c2   : > { %1170 = vmatmul.bf16.gmra.mxu0 %v1076_v52 }
 0x2c3   : > { %v1033_v53 = vpop.f32.mrf.mxu3 }
 0x2c4   : > { %v1034_v28 = vadd.f32 %v2678_v20, %v1033_v53 }
 0x2c6   : > { %v1064_v4 = vmax.f32 %v1034_v28, 0.0 }
 0x2cb   : > { %v1035_v60 = vpop.f32.mrf.mxu3 }
 0x2cc   : > { %v1036_v3 = vadd.f32 %v2678_v20, %v1035_v60 }
 0x2ce   : > { %v1065_v1 = vmax.f32 %v1036_v3, 0.0 }
 0x2d0   : > { %v1077_v55 = vpack.c.bf16 %v1065_v1, %v1064_v4  ;;  %v1811_v4 = vld [vmem:[#allocation11 + $0x8] sm:$0xff] }
 0x2d1   : > { %1315 = vmatpush.bf16.msrb.mxu1 %v1811_v4 }
 0x2d2   : > { %1175 = vmatmul.bf16.gmra.mxu0 %v1077_v55  ;;  %v1810_v55 = vld [vmem:[#allocation11] sm:$0xff] }
 0x2d3   : > { %v1038_v8 = vpop.f32.mrf.mxu3 }
 0x2d4   : > { %v1039_v18 = vadd.f32 %v2678_v20, %v1038_v8 }
 0x2d5   : > { %1316 = vmatpush.bf16.msrb.mxu1 %v1810_v55 }
 0x2d6   : > { %v1066_v34 = vmax.f32 %v1039_v18, 0.0 }
 0x2db   : > { %v1040_v21 = vpop.f32.mrf.mxu3 }
 0x2dc   : > { %v1041_v22 = vadd.f32 %v2678_v20, %v1040_v21 }
 0x2de   : > { %v1067_v9 = vmax.f32 %v1041_v22, 0.0 }
 0x2e0   : > { %v1078_v17 = vpack.c.bf16 %v1067_v9, %v1066_v34  ;;  %v2699_v34 = vld [vmem:[%s2811_s6 + $0x1] ss:$0 sm:$0xff] }
 0x2e2   : > { %1180 = vmatmul.bf16.gmra.mxu0 %v1078_v17 }
 0x2e3   : > { %v1043_v16 = vpop.f32.mrf.mxu3 }
 0x2e4   : > { %v1044_v32 = vadd.f32 %v2678_v20, %v1043_v16 }
 0x2e6   : > { %v1068_v25 = vmax.f32 %v1044_v32, 0.0 }
 0x2eb   : > { %v1045_v33 = vpop.f32.mrf.mxu3 }
 0x2ec   : > { %v1046_v36 = vadd.f32 %v2678_v20, %v1045_v33 }
 0x2ee   : > { %v1069_v37 = vmax.f32 %v1046_v36, 0.0 }
 0x2f0   : > { %v1079_v50 = vpack.c.bf16 %v1069_v37, %v1068_v25 }
 0x2f2   : > { %1185 = vmatmul.bf16.gmra.mxu0 %v1079_v50 }
 0x2f3   : > { %v1048_v47 = vpop.f32.mrf.mxu3 }
 0x2f4   : > { %v1049_v51 = vadd.f32 %v2678_v20, %v1048_v47 }
 0x2f6   : > { %v1070_v53 = vmax.f32 %v1049_v51, 0.0 }
 0x2fb   : > { %v1050_v30 = vpop.f32.mrf.mxu3 }
 0x2fc   : > { %v1051_v52 = vadd.f32 %v2678_v20, %v1050_v30 }
 0x2fe   : > { %v1071_v28 = vmax.f32 %v1051_v52, 0.0 }
 0x300   : > { %v1080_v60 = vpack.c.bf16 %v1071_v28, %v1070_v53 }
 0x302   : > { %1190 = vmatmul.bf16.gmra.mxu0 %v1080_v60 }
 0x303   : > { %v1053_v3 = vpop.f32.mrf.mxu3 }
 0x304   : > { %v1054_v1 = vadd.f32 %v2678_v20, %v1053_v3 }
 0x306   : > { %v1072_v14 = vmax.f32 %v1054_v1, 0.0 }
 0x30b   : > { %v1055_v5 = vpop.f32.mrf.mxu3 }
 0x30c   : > { %v1056_v8 = vadd.f32 %v2678_v20, %v1055_v5 }
 0x30e   : > { %v1073_v18 = vmax.f32 %v1056_v8, 0.0 }
 0x310   : > { %v1081_v21 = vpack.c.bf16 %v1073_v18, %v1072_v14 }
 0x312   : > { %1195 = vmatmul.bf16.gmra.mxu0 %v1081_v21 }
 0x31f   : > { %v1161_v22 = vpop.f32.mrf.mxu0 }
 0x320   : > { %v1162_v9 = vadd.f32 %v2699_v34, %v1161_v22 }
 0x322   : > { %v1201_v17 = vadd.f32 %v1162_v9, %v915_v46 }
 0x324   : > { %v1217_v27 = vmax.f32 %v1201_v17, 0.0 }
 0x327   : > { %v1163_v15 = vpop.f32.mrf.mxu0 }
 0x328   : > { %v1164_v16 = vadd.f32 %v2699_v34, %v1163_v15 }
 0x32a   : > { %v1202_v20 = vadd.f32 %v1164_v16, %v916_v48 }
 0x32c   : > { %v1218_v32 = vmax.f32 %v1202_v20, 0.0 }
 0x32e   : > { %v1233_v33 = vpack.c.bf16 %v1218_v32, %v1217_v27 }
 0x32f   : > { %v1166_v36 = vpop.f32.mrf.mxu0 }
 0x330   : > { %1317 = vmatmul.bf16.vlgmr.msrb.gmra.mxu1 %v1233_v33  ;;  %v1167_v25 = vadd.f32 %v2699_v34, %v1166_v36 }
 0x332   : > { %v1203_v35 = vadd.f32 %v1167_v25, %v917_v56 }
 0x334   : > { %v1219_v46 = vmax.f32 %v1203_v35, 0.0 }
 0x337   : > { %v1168_v37 = vpop.f32.mrf.mxu0 }
 0x338   : > { %v1169_v50 = vadd.f32 %v2699_v34, %v1168_v37 }
 0x33a   : > { %v1204_v29 = vadd.f32 %v1169_v50, %v918_v57 }
 0x33c   : > { %v1220_v26 = vmax.f32 %v1204_v29, 0.0 }
 0x33e   : > { %v1234_v43 = vpack.c.bf16 %v1220_v26, %v1219_v46 }
 0x33f   : > { %v1171_v48 = vpop.f32.mrf.mxu0 }
 0x340   : > { %1322 = vmatmul.bf16.gmra.mxu1 %v1234_v43  ;;  %v1172_v47 = vadd.f32 %v2699_v34, %v1171_v48 }
 0x342   : > { %v1205_v30 = vadd.f32 %v1172_v47, %v919_v0 }
 0x344   : > { %v1221_v56 = vmax.f32 %v1205_v30, 0.0 }
 0x347   : > { %v1173_v51 = vpop.f32.mrf.mxu0 }
 0x348   : > { %v1174_v52 = vadd.f32 %v2699_v34, %v1173_v51 }
 0x34a   : > { %v1206_v54 = vadd.f32 %v1174_v52, %v920_v2 }
 0x34c   : > { %v1222_v53 = vmax.f32 %v1206_v54, 0.0 }
 0x34e   : > { %v1235_v31 = vpack.c.bf16 %v1222_v53, %v1221_v56 }
 0x34f   : > { %v1176_v57 = vpop.f32.mrf.mxu0 }
 0x350   : > { %1327 = vmatmul.bf16.gmra.mxu1 %v1235_v31  ;;  %v1177_v28 = vadd.f32 %v2699_v34, %v1176_v57 }
 0x352   : > { %v1207_v3 = vadd.f32 %v1177_v28, %v921_v10 }
 0x354   : > { %v1223_v0 = vmax.f32 %v1207_v3, 0.0 }
 0x357   : > { %v1178_v60 = vpop.f32.mrf.mxu0 }
 0x358   : > { %v1179_v4 = vadd.f32 %v2699_v34, %v1178_v60 }
 0x35a   : > { %v1208_v63 = vadd.f32 %v1179_v4, %v922_v11 }
 0x35c   : > { %v1224_v1 = vmax.f32 %v1208_v63, 0.0 }
 0x35e   : > { %v1236_v45 = vpack.c.bf16 %v1224_v1, %v1223_v0 }
 0x35f   : > { %v1181_v2 = vpop.f32.mrf.mxu0 }
 0x360   : > { %1332 = vmatmul.bf16.gmra.mxu1 %v1236_v45  ;;  %v1182_v5 = vadd.f32 %v2699_v34, %v1181_v2 }
 0x362   : > { %v1209_v8 = vadd.f32 %v1182_v5, %v923_v23 }
 0x364   : > { %v1225_v10 = vmax.f32 %v1209_v8, 0.0 }
 0x367   : > { %v1183_v55 = vpop.f32.mrf.mxu0 }
 0x368   : > { %v1184_v14 = vadd.f32 %v2699_v34, %v1183_v55 }
 0x36a   : > { %v1210_v7 = vadd.f32 %v1184_v14, %v924_v24 }
 0x36c   : > { %v1226_v18 = vmax.f32 %v1210_v7, 0.0 }
 0x36e   : > { %v1237_v62 = vpack.c.bf16 %v1226_v18, %v1225_v10 }
 0x36f   : > { %v1186_v11 = vpop.f32.mrf.mxu0 }
 0x370   : > { %1337 = vmatmul.bf16.gmra.mxu1 %v1237_v62  ;;  %v1187_v21 = vadd.f32 %v2699_v34, %v1186_v11 }
 0x372   : > { %v1211_v9 = vadd.f32 %v1187_v21, %v925_v41 }
 0x374   : > { %v1227_v23 = vmax.f32 %v1211_v9, 0.0 }
 0x377   : > { %v1188_v22 = vpop.f32.mrf.mxu0 }
 0x378   : > { %v1189_v15 = vadd.f32 %v2699_v34, %v1188_v22 }
 0x37a   : > { %v1212_v13 = vadd.f32 %v1189_v15, %v926_v49 }
 0x37c   : > { %v1228_v17 = vmax.f32 %v1212_v13, 0.0 }
 0x37e   : > { %v1238_v19 = vpack.c.bf16 %v1228_v17, %v1227_v23 }
 0x37f   : > { %v1191_v24 = vpop.f32.mrf.mxu0 }
 0x380   : > { %1342 = vmatmul.bf16.gmra.mxu1 %v1238_v19  ;;  %v1192_v16 = vadd.f32 %v2699_v34, %v1191_v24 }
 0x382   : > { %v1213_v27 = vadd.f32 %v1192_v16, %v927_v44 }
 0x384   : > { %v1229_v41 = vmax.f32 %v1213_v27, 0.0 }
 0x387   : > { %v1193_v20 = vpop.f32.mrf.mxu0 }
 0x388   : > { %v1194_v32 = vadd.f32 %v2699_v34, %v1193_v20 }
 0x38a   : > { %v1214_v38 = vadd.f32 %v1194_v32, %v928_v42  ;;  %v1941_v42 = vld [vmem:[%s2813_s8] ss:$0 sm:$0xff] }
 0x38c   : > { %v1230_v40 = vmax.f32 %v1214_v38, 0.0 }
 0x38e   : > { %v1239_v49 = vpack.c.bf16 %v1230_v40, %v1229_v41 }
 0x38f   : > { %v1196_v33 = vpop.f32.mrf.mxu0 }
 0x390   : > { %1347 = vmatmul.bf16.gmra.mxu1 %v1239_v49  ;;  %v1197_v36 = vadd.f32 %v2699_v34, %v1196_v33 }
 0x392   : > { %v1215_v37 = vadd.f32 %v1197_v36, %v929_v58 }
 0x394   : > { %v1231_v35 = vmax.f32 %v1215_v37, 0.0 }
 0x397   : > { %v1198_v25 = vpop.f32.mrf.mxu0 }
 0x398   : > { %v1199_v59 = vadd.f32 %v2699_v34, %v1198_v25 }
 0x39a   : > { %v1216_v44 = vadd.f32 %v1199_v59, %v930_v12 }
 0x39c   : > { %v1232_v39 = vmax.f32 %v1216_v44, 0.0 }
 0x39e   : > { %v1240_v50 = vpack.c.bf16 %v1232_v39, %v1231_v35 }
 0x3a0   : > { %1352 = vmatmul.bf16.gmra.mxu1 %v1240_v50 }
 0x3ad   : > { %v1318_v29 = vpop.f32.mrf.mxu1 }
 0x3ae   : > { %v1319_v46 = vadd.f32 %v1941_v42, %v1318_v29 }
 0x3b0   : > { %1358 = vst [vmem:[%s2753_s2] sm:$0xff] %v1319_v46 }
 0x3b5   : > { %v1320_v6 = vpop.f32.mrf.mxu1 }
 0x3b6   : > { %v1321_v61 = vadd.f32 %v1941_v42, %v1320_v6 }
 0x3b8   : > { %1359 = vst [vmem:[%s2753_s2 + $0x8] sm:$0xff] %v1321_v61 }
 0x3bd   : > { %v1323_v58 = vpop.f32.mrf.mxu1 }
 0x3be   : > { %v1324_v12 = vadd.f32 %v1941_v42, %v1323_v58 }
 0x3c0   : > { %1360 = vst [vmem:[%s2753_s2 + $0x10] sm:$0xff] %v1324_v12 }
 0x3c5   : > { %v1325_v34 = vpop.f32.mrf.mxu1 }
 0x3c6   : > { %v1326_v26 = vadd.f32 %v1941_v42, %v1325_v34 }
 0x3c8   : > { %1361 = vst [vmem:[%s2753_s2 + $0x18] sm:$0xff] %v1326_v26 }
 0x3cd   : > { %v1328_v43 = vpop.f32.mrf.mxu1 }
 0x3ce   : > { %v1329_v48 = vadd.f32 %v1941_v42, %v1328_v43 }
 0x3d0   : > { %1362 = vst [vmem:[%s2753_s2 + $0x20] sm:$0xff] %v1329_v48 }
 0x3d5   : > { %v1330_v47 = vpop.f32.mrf.mxu1 }
 0x3d6   : > { %v1331_v51 = vadd.f32 %v1941_v42, %v1330_v47 }
 0x3d8   : > { %1363 = vst [vmem:[%s2753_s2 + $0x28] sm:$0xff] %v1331_v51 }
 0x3dd   : > { %v1333_v30 = vpop.f32.mrf.mxu1 }
 0x3de   : > { %v1334_v52 = vadd.f32 %v1941_v42, %v1333_v30 }
 0x3e0   : > { %1364 = vst [vmem:[%s2753_s2 + $0x30] sm:$0xff] %v1334_v52 }
 0x3e5   : > { %v1335_v54 = vpop.f32.mrf.mxu1 }
 0x3e6   : > { %v1336_v56 = vadd.f32 %v1941_v42, %v1335_v54 }
 0x3e8   : > { %1365 = vst [vmem:[%s2753_s2 + $0x38] sm:$0xff] %v1336_v56 }
 0x3ed   : > { %v1338_v53 = vpop.f32.mrf.mxu1 }
 0x3ee   : > { %v1339_v31 = vadd.f32 %v1941_v42, %v1338_v53 }
 0x3f0   : > { %1366 = vst [vmem:[%s2753_s2 + $0x40] sm:$0xff] %v1339_v31 }
 0x3f5   : > { %v1340_v57 = vpop.f32.mrf.mxu1 }
 0x3f6   : > { %v1341_v28 = vadd.f32 %v1941_v42, %v1340_v57 }
 0x3f8   : > { %1367 = vst [vmem:[%s2753_s2 + $0x48] sm:$0xff] %v1341_v28 }
 0x3fd   : > { %v1343_v60 = vpop.f32.mrf.mxu1 }
 0x3fe   : > { %v1344_v3 = vadd.f32 %v1941_v42, %v1343_v60 }
 0x400   : > { %1368 = vst [vmem:[%s2753_s2 + $0x50] sm:$0xff] %v1344_v3 }
 0x405   : > { %v1345_v4 = vpop.f32.mrf.mxu1 }
 0x406   : > { %v1346_v63 = vadd.f32 %v1941_v42, %v1345_v4 }
 0x408   : > { %1369 = vst [vmem:[%s2753_s2 + $0x58] sm:$0xff] %v1346_v63 }
 0x40d   : > { %v1348_v0 = vpop.f32.mrf.mxu1 }
 0x40e   : > { %v1349_v1 = vadd.f32 %v1941_v42, %v1348_v0 }
 0x410   : > { %1370 = vst [vmem:[%s2753_s2 + $0x60] sm:$0xff] %v1349_v1 }
 0x415   : > { %v1350_v45 = vpop.f32.mrf.mxu1 }
 0x416   : > { %v1351_v2 = vadd.f32 %v1941_v42, %v1350_v45 }
 0x418   : > { %1371 = vst [vmem:[%s2753_s2 + $0x68] sm:$0xff] %v1351_v2 }
 0x41d   : > { %v1353_v5 = vpop.f32.mrf.mxu1 }
 0x41e   : > { %v1354_v55 = vadd.f32 %v1941_v42, %v1353_v5 }
 0x420   : > { %1372 = vst [vmem:[%s2753_s2 + $0x70] sm:$0xff] %v1354_v55 }
 0x425   : > { %v1355_v8 = vpop.f32.mrf.mxu1 }
 0x426   : > { %v1356_v14 = vadd.f32 %v1941_v42, %v1355_v8 }
 0x428   : > { %1373 = vst [vmem:[%s2753_s2 + $0x78] sm:$0xff] %v1356_v14 }
 0x429   : > { %2149 = shalt.err (!%p2146_p9)
}
 0x42a   : > { %s2209_s27 = smov 128   ;;  %s2210_s2 = smov 8  }
 0x42b   : > { %1857 = dma.vmem_to_hbm [thread:$0]  (%p2359_p13), %s1388_s13, 2048, %s1390_s23, %s1375_s24, %s2209_s27, %s2209_s27, %s2210_s2  }
 0x42c PF: > { %s1404_s3 = sand.u32 1, %s2188_s30   ;;  %p2831_p10 = scmp.ge.s32.totalorder %s2200_s12, 2 }
 0x42d   : > { %s1405_s26 = scalar_lea.sflag [#allocation4], %s1404_s3 }
 0x42e   : > { %p1880_p11 = pnand %p2831_p10, %p2364_p4 }
 0x430   : > { %p1881_p0 = pneg %p1880_p11 }
 0x432   : > { %2183 = dma.done.wait (%p1881_p0), %s1405_s26, 2048  }
 0x433   : > { %2185 = vsyncadd (%p1881_p0), %s1405_s26, 4294965248  ;;  %p25_p2 = scmp.ge.s32.totalorder %s2339_s18, 4   ;;  %s2832_s30 = smov %s2192_s10 }
 0x434   : > { %s2833_s10 = smov %s2196_s11  ;;  %s2834_s11 = smov %s2351_s20 }
 0x435   : > { %s2835_s12 = smov %s2339_s18  ;;  %27 = sbr.rel (!%p25_p2) target bundleno = 12 (0xc), region = 125 }
 0x43a   :  { %1411 = vsyncpa [#allocation3], 1 }
 0x43b   :  { %1413 = vsyncpa [#allocation3 + $0x1], 1 }
 0x43c   :  { %1414 = vsyncpa [#allocation6], 1 }
 0x43d   :  { %1415 = vsyncpa [#allocation9], 1 }
 0x43e   :  { %1416 = vsyncpa [#allocation12], 1 }
 0x43f   :  { %1417 = vsyncpa [#allocation4], 1 }
 0x440   :  { %1419 = vsyncpa [#allocation4 + $0x1], 1 }

</bundles_post_ra>
